<compile_context>
chip_gen: v7x
topology: tpu7x:2x2x1
jax: 0.10.0
libtpu: 0.0.40
codegen_flags: <defaults>
</compile_context>

<pallas_src>
import functools

import jax
import jax.numpy as jnp
from jax import lax
from jax.experimental import pallas as pl
from jax.experimental.pallas import tpu as pltpu


_NEG_BIAS = -1e30        # finite "masked" bias: avoids the -inf -> NaN hazard
_SEQ_ALIGN = 128         # pad Nq/Nk to multiples of this (lane-dense, bf16-safe)


def _round_up(n, m):
    return ((n + m - 1) // m) * m


def _pick_tile(n, preferred):
    """Largest tile t <= preferred with t % 128 == 0 and n % t == 0 (n % 128 == 0)."""
    if n <= preferred:
        return n
    t = (preferred // _SEQ_ALIGN) * _SEQ_ALIGN
    while t > _SEQ_ALIGN and n % t != 0:
        t -= _SEQ_ALIGN
    return t if n % t == 0 else n


def _tpu_config():
    """Per-generation VMEM budget / tile sizes (v5e/v6e: 128 MiB, v7x: 64 MiB)."""
    try:
        cap = int(pltpu.get_tpu_info().vmem_capacity_bytes)
    except Exception:
        cap = 64 * 1024 * 1024
    if cap >= 96 * 1024 * 1024:          # v5e / v6e (128 MiB physical VMEM)
        return {"vmem_limit": 96 * 1024 * 1024,
                "q_tile": 512, "kv_tile": 1024, "row_tile": 512}
    # v7x: 64 MiB per TensorCore -> smaller tiles, headroom for Mosaic scratch.
    return {"vmem_limit": 40 * 1024 * 1024,
            "q_tile": 256, "kv_tile": 512, "row_tile": 256}


# --------------------- fused q/k/v projection (head split) ------------------ #

def _fused_proj_kernel(*refs, num_proj, num_heads):
    # refs = (x_0..x_{P-1}, w_0..w_{P-1}, o_0..o_{P-1})
    xs = refs[:num_proj]
    ws = refs[num_proj:2 * num_proj]
    os = refs[2 * num_proj:3 * num_proj]
    for x_ref, w_ref, o_ref in zip(xs, ws, os):
        d = o_ref.shape[-1]
        x = x_ref[0].astype(w_ref.dtype)                                   # (tn, C)
        # Single full-width MXU matmul (no bias: qkv_bias=False).
        y = jnp.dot(x, w_ref[...], preferred_element_type=jnp.float32)    # (tn, C)
        y = y.astype(o_ref.dtype)
        # Head split via static lane slices -> output directly in (B,H,N,D).
        for h in range(num_heads):
            o_ref[0, h] = y[:, h * d:(h + 1) * d]


def _project_to_heads(xs, ws, num_heads, out_dtype, *, row_tile, vmem_limit):
    """Project each xs[i]: (B,N,C) with ws[i]: (C,C)=w.T into (B,H,N,D)."""
    B, N, C = xs[0].shape
    D = C // num_heads
    P = len(xs)
    tn = _pick_tile(N, row_tile)

    x_spec = pl.BlockSpec((1, tn, C), lambda b, i: (b, i, 0))
    w_spec = pl.BlockSpec((C, C), lambda b, i: (0, 0))        # resident weight
    o_spec = pl.BlockSpec((1, num_heads, tn, D), lambda b, i: (b, 0, i, 0))

    outs = pl.pallas_call(
        functools.partial(_fused_proj_kernel, num_proj=P, num_heads=num_heads),
        out_shape=tuple(jax.ShapeDtypeStruct((B, num_heads, N, D), out_dtype)
                        for _ in range(P)),
        grid=(B, N // tn),
        in_specs=[x_spec] * P + [w_spec] * P,
        out_specs=tuple(o_spec for _ in range(P)),
        compiler_params=pltpu.CompilerParams(
            dimension_semantics=("parallel", "parallel"),
            vmem_limit_bytes=vmem_limit),
    )(*xs, *ws)
    return list(outs)


# --------------------- block-sparsity schedule from the mask ---------------- #

def _block_schedule(mask_bool, tq, tk):
    """Per q-tile: count of non-empty KV blocks + compacted list of their ids."""
    Nq, Nk = mask_bool.shape
    nq_t, nk_t = Nq // tq, Nk // tk
    occ = mask_bool.reshape(nq_t, tq, nk_t, tk).any(axis=(1, 3))        # (nq_t, nk_t)
    count = occ.sum(axis=-1).astype(jnp.int32)                          # (nq_t,)
    # Stable sort: occupied block ids first (in original order), empty last.
    order = jnp.argsort(jnp.logical_not(occ).astype(jnp.int32),
                        axis=-1, stable=True).astype(jnp.int32)
    # Past the occupied prefix, repeat the last occupied id so the pipeline's
    # block index does not change -> skipped steps issue no new DMA.
    pos = jnp.minimum(jnp.arange(nk_t, dtype=jnp.int32)[None, :],
                      jnp.maximum(count[:, None] - 1, 0))
    kvid = jnp.take_along_axis(order, pos, axis=-1).astype(jnp.int32)
    return count, kvid


# ------------------------- flash-style masked attention --------------------- #

def _flash_attn_kernel(count_ref, kvid_ref, q_ref, k_ref, v_ref, mask_ref, o_ref,
                       m_sc, l_sc, acc_sc, *, bf16_exp):
    qi = pl.program_id(1)
    ki = pl.program_id(2)

    @pl.when(ki == 0)
    def _():
        m_sc[...] = jnp.full(m_sc.shape, -jnp.inf, m_sc.dtype)
        l_sc[...] = jnp.zeros(l_sc.shape, l_sc.dtype)
        acc_sc[...] = jnp.zeros(acc_sc.shape, acc_sc.dtype)

    # Sparsity: fully-masked KV blocks are skipped entirely (no MXU, no exp).
    @pl.when(ki < count_ref[qi])
    def _():
        q = q_ref[0]                                    # (H, tq, D)
        k = k_ref[0]                                    # (H, tk, D)
        v = v_ref[0]                                    # (H, tk, D)

        # Batched over heads, contracting head_dim (scale already folded in wq).
        s = lax.dot_general(q, k, (((2,), (2,)), ((0,), (0,))),
                            preferred_element_type=jnp.float32)     # (H, tq, tk)
        # In-kernel mask bias from the int8 mask block: one select per step.
        s = jnp.where(mask_ref[...][None] != 0, s, _NEG_BIAS)

        m_prev = m_sc[...]
        m_new = jnp.maximum(m_prev, jnp.max(s, axis=-1, keepdims=True))
        alpha = jnp.exp(m_prev - m_new)
        if bf16_exp:
            # bf16 EUP exp on v6e/v7x; l is still accumulated in f32.
            p = jnp.exp((s - m_new).astype(jnp.bfloat16))
            l_upd = jnp.sum(p.astype(jnp.float32), axis=-1, keepdims=True)
        else:
            p = jnp.exp(s - m_new)
            l_upd = jnp.sum(p, axis=-1, keepdims=True)
        l_sc[...] = alpha * l_sc[...] + l_upd
        acc_sc[...] = alpha * acc_sc[...] + lax.dot_general(
            p.astype(v.dtype), v, (((2,), (1,)), ((0,), (0,))),
            preferred_element_type=jnp.float32)
        m_sc[...] = m_new

    @pl.when(ki == pl.num_programs(2) - 1)
    def _():
        inv_l = pl.reciprocal(l_sc[...], approx=True)           # EUP, not VALU div
        o_ref[0] = (acc_sc[...] * inv_l).astype(o_ref.dtype)


def _flash_attention(q, k, v, mask_i8, count, kvid, *, tq, tk, vmem_limit, bf16_exp):
    """q: (B,H,Nq,D), k/v: (B,H,Nk,D), mask_i8: (Nq,Nk) int8 -> (B,H,Nq,D)."""
    B, H, Nq, D = q.shape
    Nk = k.shape[2]

    grid_spec = pltpu.PrefetchScalarGridSpec(
        num_scalar_prefetch=2,
        grid=(B, Nq // tq, Nk // tk),
        in_specs=[
            pl.BlockSpec((1, H, tq, D), lambda b, qi, ki, cnt, kid: (b, 0, qi, 0)),
            pl.BlockSpec((1, H, tk, D),
                         lambda b, qi, ki, cnt, kid: (b, 0, kid[qi, ki], 0)),
            pl.BlockSpec((1, H, tk, D),
                         lambda b, qi, ki, cnt, kid: (b, 0, kid[qi, ki], 0)),
            pl.BlockSpec((tq, tk), lambda b, qi, ki, cnt, kid: (qi, kid[qi, ki])),
        ],
        out_specs=pl.BlockSpec((1, H, tq, D),
                               lambda b, qi, ki, cnt, kid: (b, 0, qi, 0)),
        scratch_shapes=[
            pltpu.VMEM((H, tq, 1), jnp.float32),   # running max
            pltpu.VMEM((H, tq, 1), jnp.float32),   # running denominator
            pltpu.VMEM((H, tq, D), jnp.float32),   # running numerator
        ],
    )
    return pl.pallas_call(
        functools.partial(_flash_attn_kernel, bf16_exp=bf16_exp),
        out_shape=jax.ShapeDtypeStruct((B, H, Nq, D), q.dtype),
        grid_spec=grid_spec,
        compiler_params=pltpu.CompilerParams(
            dimension_semantics=("parallel", "parallel", "arbitrary"),
            vmem_limit_bytes=vmem_limit),
    )(count, kvid, q, k, v, mask_i8)


# ------------------ output projection (folds the head merge) ---------------- #

def _out_proj_kernel(x_ref, w_ref, b_ref, o_ref, *, num_heads):
    # Head merge folded into the in_spec: lane-concat the per-head slabs, then
    # ONE full-depth (tn, C) x (C, C) MXU matmul (K = H*D = C).
    x = jnp.concatenate([x_ref[0, h] for h in range(num_heads)], axis=-1)  # (tn, C)
    y = jnp.dot(x.astype(w_ref.dtype), w_ref[...],
                preferred_element_type=jnp.float32)                        # (tn, C)
    o_ref[0] = (y + b_ref[...]).astype(o_ref.dtype)      # lane-dense (tn, C) store


def _out_projection(x, w_cc, bias_1c, num_heads, out_dtype, *, row_tile, vmem_limit):
    """x: (B,H,N,D), w_cc: (C,C)=w.T, bias_1c: (1,C) -> (B,N,C)."""
    B, H, N, D = x.shape
    C = w_cc.shape[-1]
    tn = _pick_tile(N, row_tile)
    return pl.pallas_call(
        functools.partial(_out_proj_kernel, num_heads=num_heads),
        out_shape=jax.ShapeDtypeStruct((B, N, C), out_dtype),
        grid=(B, N // tn),
        in_specs=[
            pl.BlockSpec((1, H, tn, D), lambda b, i: (b, 0, i, 0)),
            pl.BlockSpec((C, C), lambda b, i: (0, 0)),
            pl.BlockSpec((1, C), lambda b, i: (0, 0)),
        ],
        out_specs=pl.BlockSpec((1, tn, C), lambda b, i: (b, i, 0)),
        compiler_params=pltpu.CompilerParams(
            dimension_semantics=("parallel", "parallel"),
            vmem_limit_bytes=vmem_limit),
    )(x, w_cc, bias_1c)


# ------------------------------ module wrapper ------------------------------ #

def init_params(key, dim, num_heads):
    ks = jax.random.split(key, 5)
    std = 0.02
    return {
        "num_heads": num_heads,
        "wq": jax.random.normal(ks[0], (dim, dim), jnp.float32) * std,
        "wk": jax.random.normal(ks[1], (dim, dim), jnp.float32) * std,
        "wv": jax.random.normal(ks[2], (dim, dim), jnp.float32) * std,
        "wo": jax.random.normal(ks[3], (dim, dim), jnp.float32) * std,
        "bo": jax.random.normal(ks[4], (dim,), jnp.float32) * std,
    }


def sparse_cross_attention(params, query, key, value, qpos, kpos, mask,
                           *, compute_dtype=None):
    # rope is None in the reference module -> qpos/kpos unused.
    # TODO(synk): rope application (module default rope=None) not implemented.
    del qpos, kpos
    B, Nq, C = query.shape
    Nk = key.shape[1]
    H = params["num_heads"]
    D = C // H
    scale = D ** (-0.5)
    cdt = jnp.dtype(compute_dtype) if compute_dtype is not None else query.dtype
    cfg = _tpu_config()

    # Pad sequences to multiples of 128 so tiles stay at their tuned sizes
    # on every generation; padded keys are masked, padded q rows sliced off.
    Nq_p = _round_up(Nq, _SEQ_ALIGN)
    Nk_p = _round_up(Nk, _SEQ_ALIGN)
    q_in = jnp.pad(query, ((0, 0), (0, Nq_p - Nq), (0, 0)))
    k_in = jnp.pad(key, ((0, 0), (0, Nk_p - Nk), (0, 0)))
    v_in = jnp.pad(value, ((0, 0), (0, Nk_p - Nk), (0, 0)))
    mask_p = jnp.pad(mask.astype(bool), ((0, Nq_p - Nq), (0, Nk_p - Nk)))

    # Torch nn.Linear stores (C_out, C_in); the matmul uses w.T.  The attention
    # scale is folded into wq (removes a VALU pass over the score tensor).
    wq = (params["wq"].T * scale).astype(cdt)
    wk = params["wk"].T.astype(cdt)
    wv = params["wv"].T.astype(cdt)
    wo = params["wo"].T.astype(cdt)                      # (C_in=H*D, C_out)
    bo = params["bo"].reshape(1, C).astype(jnp.float32)

    # qkv_bias=False -> projection kernels take no bias at all.
    if Nq_p == Nk_p:
        # Single fused pallas_call for all three projections.
        q, k, v = _project_to_heads([q_in, k_in, v_in], [wq, wk, wv], H, cdt,
                                    row_tile=cfg["row_tile"],
                                    vmem_limit=cfg["vmem_limit"])
    else:
        (q,) = _project_to_heads([q_in], [wq], H, cdt,
                                 row_tile=cfg["row_tile"],
                                 vmem_limit=cfg["vmem_limit"])
        k, v = _project_to_heads([k_in, v_in], [wk, wv], H, cdt,
                                 row_tile=cfg["row_tile"],
                                 vmem_limit=cfg["vmem_limit"])

    tq = _pick_tile(Nq_p, cfg["q_tile"])
    tk = _pick_tile(Nk_p, cfg["kv_tile"])
    # Block-sparsity schedule: per q-tile compacted list of non-empty KV blocks.
    count, kvid = _block_schedule(mask_p, tq, tk)
    mask_i8 = mask_p.astype(jnp.int8)        # 4x less mask HBM traffic vs f32 bias

    bf16_exp = (jnp.dtype(cdt) == jnp.dtype(jnp.bfloat16))
    attn = _flash_attention(q, k, v, mask_i8, count, kvid, tq=tq, tk=tk,
                            vmem_limit=cfg["vmem_limit"], bf16_exp=bf16_exp)
    out = _out_projection(attn, wo, bo, H, query.dtype,
                          row_tile=cfg["row_tile"], vmem_limit=cfg["vmem_limit"])
    # attn_drop / proj_drop are identity (p = 0.0).
    return out[:, :Nq, :]


# Plain-JAX reference (mirrors the PyTorch forward) for a correctness check.
def reference(params, query, key, value, mask):
    B, Nq, C = query.shape
    H = params["num_heads"]
    D = C // H
    scale = D ** (-0.5)
    q = (query @ params["wq"].T).reshape(B, Nq, H, D).transpose(0, 2, 1, 3)
    k = (key @ params["wk"].T).reshape(B, key.shape[1], H, D).transpose(0, 2, 1, 3)
    v = (value @ params["wv"].T).reshape(B, value.shape[1], H, D).transpose(0, 2, 1, 3)
    attn = jnp.einsum("bhqd,bhkd->bhqk", q, k) * scale
    attn = jnp.where(mask[None, None], attn, -jnp.inf)
    attn = jax.nn.softmax(attn, axis=-1)
    x = jnp.einsum("bhqk,bhkd->bhqd", attn, v).transpose(0, 2, 1, 3).reshape(B, Nq, C)
    return x @ params["wo"].T + params["bo"]


if __name__ == "__main__":
    B, Nq, Nk, dim, num_heads = 2, 16, 16, 64, 8

    root = jax.random.PRNGKey(0)
    kp, kq, kk, kv, km = jax.random.split(root, 5)
    params = init_params(kp, dim, num_heads)

    query = jax.random.normal(kq, (B, Nq, dim), jnp.float32)
    key = jax.random.normal(kk, (B, Nk, dim), jnp.float32)
    value = jax.random.normal(kv, (B, Nk, dim), jnp.float32)

    # Sparse boolean mask (Nq, Nk); guarantee at least one True per row so the
    # softmax is well-defined (all-masked rows give NaN in PyTorch too).
    mask = jax.random.bernoulli(km, 0.5, (Nq, Nk))
    mask = mask.at[jnp.arange(Nq), jnp.arange(Nq) % Nk].set(True)

    ref = reference(params, query, key, value, mask)

    # Full-precision compute path.
    out = sparse_cross_attention(params, query, key, value, None, None, mask)
    out = jax.block_until_ready(out)
    assert out.shape == (B, Nq, dim)
    assert jnp.allclose(out, ref, atol=2e-3, rtol=2e-3), \
        f"f32 max abs err {jnp.max(jnp.abs(out - ref))}"

    # bf16 matmul path (f32 accumulation, bf16 exp) -- recommended on v6e/v7x.
    out_bf16 = sparse_cross_attention(params, query, key, value, None, None, mask,
                                      compute_dtype=jnp.bfloat16)
    out_bf16 = jax.block_until_ready(out_bf16)
    assert jnp.allclose(out_bf16, ref, atol=3e-2, rtol=3e-2), \
        f"bf16 max abs err {jnp.max(jnp.abs(out_bf16 - ref))}"

    print("KERNEL_OK")
</pallas_src>

<mosaic_0001>
module attributes {stable_mosaic.version = 11 : i64} {
  func.func @_fused_proj_kernel(%arg0: i32, %arg1: i32, %arg2: memref<1x128x64xf32, #tpu.memory_space<vmem>>, %arg3: memref<1x128x64xf32, #tpu.memory_space<vmem>>, %arg4: memref<1x128x64xf32, #tpu.memory_space<vmem>>, %arg5: memref<64x64xf32, #tpu.memory_space<vmem>>, %arg6: memref<64x64xf32, #tpu.memory_space<vmem>>, %arg7: memref<64x64xf32, #tpu.memory_space<vmem>>, %arg8: memref<1x8x128x8xf32, #tpu.memory_space<vmem>>, %arg9: memref<1x8x128x8xf32, #tpu.memory_space<vmem>>, %arg10: memref<1x8x128x8xf32, #tpu.memory_space<vmem>>) attributes {dimension_semantics = [#tpu.dimension_semantics<parallel>, #tpu.dimension_semantics<parallel>], iteration_bounds = array<i64: 2, 1>, scalar_prefetch = 0 : i64, scratch_operands = 0 : i64, tpu.core_type = #tpu.core_type<tc>, window_params = [{transform_indices = @transform_0, window_bounds = array<i64: 1, 128, 64>}, {transform_indices = @transform_1, window_bounds = array<i64: 1, 128, 64>}, {transform_indices = @transform_2, window_bounds = array<i64: 1, 128, 64>}, {pipeline_mode = #tpu.pipeline_mode<synchronous>, transform_indices = @transform_3, window_bounds = array<i64: 64, 64>}, {pipeline_mode = #tpu.pipeline_mode<synchronous>, transform_indices = @transform_4, window_bounds = array<i64: 64, 64>}, {pipeline_mode = #tpu.pipeline_mode<synchronous>, transform_indices = @transform_5, window_bounds = array<i64: 64, 64>}, {transform_indices = @transform_6, window_bounds = array<i64: 1, 8, 128, 8>}, {transform_indices = @transform_7, window_bounds = array<i64: 1, 8, 128, 8>}, {transform_indices = @transform_8, window_bounds = array<i64: 1, 8, 128, 8>}]} {
    %c0 = arith.constant 0 : index
    %c0_0 = arith.constant 0 : index
    %c0_1 = arith.constant 0 : index
    %0 = vector.load %arg2[%c0, %c0_0, %c0_1] : memref<1x128x64xf32, #tpu.memory_space<vmem>>, vector<1x128x64xf32>
    %1 = vector.shape_cast %0 : vector<1x128x64xf32> to vector<128x64xf32>
    %c0_2 = arith.constant 0 : index
    %c0_3 = arith.constant 0 : index
    %2 = vector.load %arg5[%c0_2, %c0_3] : memref<64x64xf32, #tpu.memory_space<vmem>>, vector<64x64xf32>
    %cst = arith.constant dense<0.000000e+00> : vector<128x64xf32>
    %3 = tpu.matmul %1, %2, %cst {dimension_numbers = #tpu.dot_dimension_numbers<[1], [0], [0], [1], [0, 0, 1, 1], [], []>} : vector<128x64xf32>, vector<64x64xf32>, vector<128x64xf32> -> vector<128x64xf32>
    %4 = vector.extract_strided_slice %3 {offsets = [0, 0], sizes = [128, 8], strides = [1, 1]} : vector<128x64xf32> to vector<128x8xf32>
    %c0_4 = arith.constant 0 : index
    %c0_5 = arith.constant 0 : index
    %c0_6 = arith.constant 0 : index
    %c0_7 = arith.constant 0 : index
    %5 = vector.load %arg8[%c0_4, %c0_5, %c0_6, %c0_7] : memref<1x8x128x8xf32, #tpu.memory_space<vmem>>, vector<1x1x128x8xf32>
    %6 = vector.shape_cast %5 : vector<1x1x128x8xf32> to vector<128x8xf32>
    %7 = vector.shape_cast %4 : vector<128x8xf32> to vector<1x1x128x8xf32>
    tpu.vector_store %arg8[%c0_4, %c0_5, %c0_6, %c0_7], %7 {strides = array<i32>} : memref<1x8x128x8xf32, #tpu.memory_space<vmem>>, vector<1x1x128x8xf32>,
    %8 = vector.extract_strided_slice %3 {offsets = [0, 8], sizes = [128, 8], strides = [1, 1]} : vector<128x64xf32> to vector<128x8xf32>
    %c0_8 = arith.constant 0 : index
    %c1 = arith.constant 1 : index
    %c0_9 = arith.constant 0 : index
    %c0_10 = arith.constant 0 : index
    %9 = vector.load %arg8[%c0_8, %c1, %c0_9, %c0_10] : memref<1x8x128x8xf32, #tpu.memory_space<vmem>>, vector<1x1x128x8xf32>
    %10 = vector.shape_cast %9 : vector<1x1x128x8xf32> to vector<128x8xf32>
    %11 = vector.shape_cast %8 : vector<128x8xf32> to vector<1x1x128x8xf32>
    tpu.vector_store %arg8[%c0_8, %c1, %c0_9, %c0_10], %11 {strides = array<i32>} : memref<1x8x128x8xf32, #tpu.memory_space<vmem>>, vector<1x1x128x8xf32>,
    %12 = vector.extract_strided_slice %3 {offsets = [0, 16], sizes = [128, 8], strides = [1, 1]} : vector<128x64xf32> to vector<128x8xf32>
    %c0_11 = arith.constant 0 : index
    %c2 = arith.constant 2 : index
    %c0_12 = arith.constant 0 : index
    %c0_13 = arith.constant 0 : index
    %13 = vector.load %arg8[%c0_11, %c2, %c0_12, %c0_13] : memref<1x8x128x8xf32, #tpu.memory_space<vmem>>, vector<1x1x128x8xf32>
    %14 = vector.shape_cast %13 : vector<1x1x128x8xf32> to vector<128x8xf32>
    %15 = vector.shape_cast %12 : vector<128x8xf32> to vector<1x1x128x8xf32>
    tpu.vector_store %arg8[%c0_11, %c2, %c0_12, %c0_13], %15 {strides = array<i32>} : memref<1x8x128x8xf32, #tpu.memory_space<vmem>>, vector<1x1x128x8xf32>,
    %16 = vector.extract_strided_slice %3 {offsets = [0, 24], sizes = [128, 8], strides = [1, 1]} : vector<128x64xf32> to vector<128x8xf32>
    %c0_14 = arith.constant 0 : index
    %c3 = arith.constant 3 : index
    %c0_15 = arith.constant 0 : index
    %c0_16 = arith.constant 0 : index
    %17 = vector.load %arg8[%c0_14, %c3, %c0_15, %c0_16] : memref<1x8x128x8xf32, #tpu.memory_space<vmem>>, vector<1x1x128x8xf32>
    %18 = vector.shape_cast %17 : vector<1x1x128x8xf32> to vector<128x8xf32>
    %19 = vector.shape_cast %16 : vector<128x8xf32> to vector<1x1x128x8xf32>
    tpu.vector_store %arg8[%c0_14, %c3, %c0_15, %c0_16], %19 {strides = array<i32>} : memref<1x8x128x8xf32, #tpu.memory_space<vmem>>, vector<1x1x128x8xf32>,
    %20 = vector.extract_strided_slice %3 {offsets = [0, 32], sizes = [128, 8], strides = [1, 1]} : vector<128x64xf32> to vector<128x8xf32>
    %c0_17 = arith.constant 0 : index
    %c4 = arith.constant 4 : index
    %c0_18 = arith.constant 0 : index
    %c0_19 = arith.constant 0 : index
    %21 = vector.load %arg8[%c0_17, %c4, %c0_18, %c0_19] : memref<1x8x128x8xf32, #tpu.memory_space<vmem>>, vector<1x1x128x8xf32>
    %22 = vector.shape_cast %21 : vector<1x1x128x8xf32> to vector<128x8xf32>
    %23 = vector.shape_cast %20 : vector<128x8xf32> to vector<1x1x128x8xf32>
    tpu.vector_store %arg8[%c0_17, %c4, %c0_18, %c0_19], %23 {strides = array<i32>} : memref<1x8x128x8xf32, #tpu.memory_space<vmem>>, vector<1x1x128x8xf32>,
    %24 = vector.extract_strided_slice %3 {offsets = [0, 40], sizes = [128, 8], strides = [1, 1]} : vector<128x64xf32> to vector<128x8xf32>
    %c0_20 = arith.constant 0 : index
    %c5 = arith.constant 5 : index
    %c0_21 = arith.constant 0 : index
    %c0_22 = arith.constant 0 : index
    %25 = vector.load %arg8[%c0_20, %c5, %c0_21, %c0_22] : memref<1x8x128x8xf32, #tpu.memory_space<vmem>>, vector<1x1x128x8xf32>
    %26 = vector.shape_cast %25 : vector<1x1x128x8xf32> to vector<128x8xf32>
    %27 = vector.shape_cast %24 : vector<128x8xf32> to vector<1x1x128x8xf32>
    tpu.vector_store %arg8[%c0_20, %c5, %c0_21, %c0_22], %27 {strides = array<i32>} : memref<1x8x128x8xf32, #tpu.memory_space<vmem>>, vector<1x1x128x8xf32>,
    %28 = vector.extract_strided_slice %3 {offsets = [0, 48], sizes = [128, 8], strides = [1, 1]} : vector<128x64xf32> to vector<128x8xf32>
    %c0_23 = arith.constant 0 : index
    %c6 = arith.constant 6 : index
    %c0_24 = arith.constant 0 : index
    %c0_25 = arith.constant 0 : index
    %29 = vector.load %arg8[%c0_23, %c6, %c0_24, %c0_25] : memref<1x8x128x8xf32, #tpu.memory_space<vmem>>, vector<1x1x128x8xf32>
    %30 = vector.shape_cast %29 : vector<1x1x128x8xf32> to vector<128x8xf32>
    %31 = vector.shape_cast %28 : vector<128x8xf32> to vector<1x1x128x8xf32>
    tpu.vector_store %arg8[%c0_23, %c6, %c0_24, %c0_25], %31 {strides = array<i32>} : memref<1x8x128x8xf32, #tpu.memory_space<vmem>>, vector<1x1x128x8xf32>,
    %32 = vector.extract_strided_slice %3 {offsets = [0, 56], sizes = [128, 8], strides = [1, 1]} : vector<128x64xf32> to vector<128x8xf32>
    %c0_26 = arith.constant 0 : index
    %c7 = arith.constant 7 : index
    %c0_27 = arith.constant 0 : index
    %c0_28 = arith.constant 0 : index
    %33 = vector.load %arg8[%c0_26, %c7, %c0_27, %c0_28] : memref<1x8x128x8xf32, #tpu.memory_space<vmem>>, vector<1x1x128x8xf32>
    %34 = vector.shape_cast %33 : vector<1x1x128x8xf32> to vector<128x8xf32>
    %35 = vector.shape_cast %32 : vector<128x8xf32> to vector<1x1x128x8xf32>
    tpu.vector_store %arg8[%c0_26, %c7, %c0_27, %c0_28], %35 {strides = array<i32>} : memref<1x8x128x8xf32, #tpu.memory_space<vmem>>, vector<1x1x128x8xf32>,
    %c0_29 = arith.constant 0 : index
    %c0_30 = arith.constant 0 : index
    %c0_31 = arith.constant 0 : index
    %36 = vector.load %arg3[%c0_29, %c0_30, %c0_31] : memref<1x128x64xf32, #tpu.memory_space<vmem>>, vector<1x128x64xf32>
    %37 = vector.shape_cast %36 : vector<1x128x64xf32> to vector<128x64xf32>
    %c0_32 = arith.constant 0 : index
    %c0_33 = arith.constant 0 : index
    %38 = vector.load %arg6[%c0_32, %c0_33] : memref<64x64xf32, #tpu.memory_space<vmem>>, vector<64x64xf32>
    %cst_34 = arith.constant dense<0.000000e+00> : vector<128x64xf32>
    %39 = tpu.matmul %37, %38, %cst_34 {dimension_numbers = #tpu.dot_dimension_numbers<[1], [0], [0], [1], [0, 0, 1, 1], [], []>} : vector<128x64xf32>, vector<64x64xf32>, vector<128x64xf32> -> vector<128x64xf32>
    %40 = vector.extract_strided_slice %39 {offsets = [0, 0], sizes = [128, 8], strides = [1, 1]} : vector<128x64xf32> to vector<128x8xf32>
    %c0_35 = arith.constant 0 : index
    %c0_36 = arith.constant 0 : index
    %c0_37 = arith.constant 0 : index
    %c0_38 = arith.constant 0 : index
    %41 = vector.load %arg9[%c0_35, %c0_36, %c0_37, %c0_38] : memref<1x8x128x8xf32, #tpu.memory_space<vmem>>, vector<1x1x128x8xf32>
    %42 = vector.shape_cast %41 : vector<1x1x128x8xf32> to vector<128x8xf32>
    %43 = vector.shape_cast %40 : vector<128x8xf32> to vector<1x1x128x8xf32>
    tpu.vector_store %arg9[%c0_35, %c0_36, %c0_37, %c0_38], %43 {strides = array<i32>} : memref<1x8x128x8xf32, #tpu.memory_space<vmem>>, vector<1x1x128x8xf32>,
    %44 = vector.extract_strided_slice %39 {offsets = [0, 8], sizes = [128, 8], strides = [1, 1]} : vector<128x64xf32> to vector<128x8xf32>
    %c0_39 = arith.constant 0 : index
    %c1_40 = arith.constant 1 : index
    %c0_41 = arith.constant 0 : index
    %c0_42 = arith.constant 0 : index
    %45 = vector.load %arg9[%c0_39, %c1_40, %c0_41, %c0_42] : memref<1x8x128x8xf32, #tpu.memory_space<vmem>>, vector<1x1x128x8xf32>
    %46 = vector.shape_cast %45 : vector<1x1x128x8xf32> to vector<128x8xf32>
    %47 = vector.shape_cast %44 : vector<128x8xf32> to vector<1x1x128x8xf32>
    tpu.vector_store %arg9[%c0_39, %c1_40, %c0_41, %c0_42], %47 {strides = array<i32>} : memref<1x8x128x8xf32, #tpu.memory_space<vmem>>, vector<1x1x128x8xf32>,
    %48 = vector.extract_strided_slice %39 {offsets = [0, 16], sizes = [128, 8], strides = [1, 1]} : vector<128x64xf32> to vector<128x8xf32>
    %c0_43 = arith.constant 0 : index
    %c2_44 = arith.constant 2 : index
    %c0_45 = arith.constant 0 : index
    %c0_46 = arith.constant 0 : index
    %49 = vector.load %arg9[%c0_43, %c2_44, %c0_45, %c0_46] : memref<1x8x128x8xf32, #tpu.memory_space<vmem>>, vector<1x1x128x8xf32>
    %50 = vector.shape_cast %49 : vector<1x1x128x8xf32> to vector<128x8xf32>
    %51 = vector.shape_cast %48 : vector<128x8xf32> to vector<1x1x128x8xf32>
    tpu.vector_store %arg9[%c0_43, %c2_44, %c0_45, %c0_46], %51 {strides = array<i32>} : memref<1x8x128x8xf32, #tpu.memory_space<vmem>>, vector<1x1x128x8xf32>,
    %52 = vector.extract_strided_slice %39 {offsets = [0, 24], sizes = [128, 8], strides = [1, 1]} : vector<128x64xf32> to vector<128x8xf32>
    %c0_47 = arith.constant 0 : index
    %c3_48 = arith.constant 3 : index
    %c0_49 = arith.constant 0 : index
    %c0_50 = arith.constant 0 : index
    %53 = vector.load %arg9[%c0_47, %c3_48, %c0_49, %c0_50] : memref<1x8x128x8xf32, #tpu.memory_space<vmem>>, vector<1x1x128x8xf32>
    %54 = vector.shape_cast %53 : vector<1x1x128x8xf32> to vector<128x8xf32>
    %55 = vector.shape_cast %52 : vector<128x8xf32> to vector<1x1x128x8xf32>
    tpu.vector_store %arg9[%c0_47, %c3_48, %c0_49, %c0_50], %55 {strides = array<i32>} : memref<1x8x128x8xf32, #tpu.memory_space<vmem>>, vector<1x1x128x8xf32>,
    %56 = vector.extract_strided_slice %39 {offsets = [0, 32], sizes = [128, 8], strides = [1, 1]} : vector<128x64xf32> to vector<128x8xf32>
    %c0_51 = arith.constant 0 : index
    %c4_52 = arith.constant 4 : index
    %c0_53 = arith.constant 0 : index
    %c0_54 = arith.constant 0 : index
    %57 = vector.load %arg9[%c0_51, %c4_52, %c0_53, %c0_54] : memref<1x8x128x8xf32, #tpu.memory_space<vmem>>, vector<1x1x128x8xf32>
    %58 = vector.shape_cast %57 : vector<1x1x128x8xf32> to vector<128x8xf32>
    %59 = vector.shape_cast %56 : vector<128x8xf32> to vector<1x1x128x8xf32>
    tpu.vector_store %arg9[%c0_51, %c4_52, %c0_53, %c0_54], %59 {strides = array<i32>} : memref<1x8x128x8xf32, #tpu.memory_space<vmem>>, vector<1x1x128x8xf32>,
    %60 = vector.extract_strided_slice %39 {offsets = [0, 40], sizes = [128, 8], strides = [1, 1]} : vector<128x64xf32> to vector<128x8xf32>
    %c0_55 = arith.constant 0 : index
    %c5_56 = arith.constant 5 : index
    %c0_57 = arith.constant 0 : index
    %c0_58 = arith.constant 0 : index
    %61 = vector.load %arg9[%c0_55, %c5_56, %c0_57, %c0_58] : memref<1x8x128x8xf32, #tpu.memory_space<vmem>>, vector<1x1x128x8xf32>
    %62 = vector.shape_cast %61 : vector<1x1x128x8xf32> to vector<128x8xf32>
    %63 = vector.shape_cast %60 : vector<128x8xf32> to vector<1x1x128x8xf32>
    tpu.vector_store %arg9[%c0_55, %c5_56, %c0_57, %c0_58], %63 {strides = array<i32>} : memref<1x8x128x8xf32, #tpu.memory_space<vmem>>, vector<1x1x128x8xf32>,
    %64 = vector.extract_strided_slice %39 {offsets = [0, 48], sizes = [128, 8], strides = [1, 1]} : vector<128x64xf32> to vector<128x8xf32>
    %c0_59 = arith.constant 0 : index
    %c6_60 = arith.constant 6 : index
    %c0_61 = arith.constant 0 : index
    %c0_62 = arith.constant 0 : index
    %65 = vector.load %arg9[%c0_59, %c6_60, %c0_61, %c0_62] : memref<1x8x128x8xf32, #tpu.memory_space<vmem>>, vector<1x1x128x8xf32>
    %66 = vector.shape_cast %65 : vector<1x1x128x8xf32> to vector<128x8xf32>
    %67 = vector.shape_cast %64 : vector<128x8xf32> to vector<1x1x128x8xf32>
    tpu.vector_store %arg9[%c0_59, %c6_60, %c0_61, %c0_62], %67 {strides = array<i32>} : memref<1x8x128x8xf32, #tpu.memory_space<vmem>>, vector<1x1x128x8xf32>,
    %68 = vector.extract_strided_slice %39 {offsets = [0, 56], sizes = [128, 8], strides = [1, 1]} : vector<128x64xf32> to vector<128x8xf32>
    %c0_63 = arith.constant 0 : index
    %c7_64 = arith.constant 7 : index
    %c0_65 = arith.constant 0 : index
    %c0_66 = arith.constant 0 : index
    %69 = vector.load %arg9[%c0_63, %c7_64, %c0_65, %c0_66] : memref<1x8x128x8xf32, #tpu.memory_space<vmem>>, vector<1x1x128x8xf32>
    %70 = vector.shape_cast %69 : vector<1x1x128x8xf32> to vector<128x8xf32>
    %71 = vector.shape_cast %68 : vector<128x8xf32> to vector<1x1x128x8xf32>
    tpu.vector_store %arg9[%c0_63, %c7_64, %c0_65, %c0_66], %71 {strides = array<i32>} : memref<1x8x128x8xf32, #tpu.memory_space<vmem>>, vector<1x1x128x8xf32>,
    %c0_67 = arith.constant 0 : index
    %c0_68 = arith.constant 0 : index
    %c0_69 = arith.constant 0 : index
    %72 = vector.load %arg4[%c0_67, %c0_68, %c0_69] : memref<1x128x64xf32, #tpu.memory_space<vmem>>, vector<1x128x64xf32>
    %73 = vector.shape_cast %72 : vector<1x128x64xf32> to vector<128x64xf32>
    %c0_70 = arith.constant 0 : index
    %c0_71 = arith.constant 0 : index
    %74 = vector.load %arg7[%c0_70, %c0_71] : memref<64x64xf32, #tpu.memory_space<vmem>>, vector<64x64xf32>
    %cst_72 = arith.constant dense<0.000000e+00> : vector<128x64xf32>
    %75 = tpu.matmul %73, %74, %cst_72 {dimension_numbers = #tpu.dot_dimension_numbers<[1], [0], [0], [1], [0, 0, 1, 1], [], []>} : vector<128x64xf32>, vector<64x64xf32>, vector<128x64xf32> -> vector<128x64xf32>
    %76 = vector.extract_strided_slice %75 {offsets = [0, 0], sizes = [128, 8], strides = [1, 1]} : vector<128x64xf32> to vector<128x8xf32>
    %c0_73 = arith.constant 0 : index
    %c0_74 = arith.constant 0 : index
    %c0_75 = arith.constant 0 : index
    %c0_76 = arith.constant 0 : index
    %77 = vector.load %arg10[%c0_73, %c0_74, %c0_75, %c0_76] : memref<1x8x128x8xf32, #tpu.memory_space<vmem>>, vector<1x1x128x8xf32>
    %78 = vector.shape_cast %77 : vector<1x1x128x8xf32> to vector<128x8xf32>
    %79 = vector.shape_cast %76 : vector<128x8xf32> to vector<1x1x128x8xf32>
    tpu.vector_store %arg10[%c0_73, %c0_74, %c0_75, %c0_76], %79 {strides = array<i32>} : memref<1x8x128x8xf32, #tpu.memory_space<vmem>>, vector<1x1x128x8xf32>,
    %80 = vector.extract_strided_slice %75 {offsets = [0, 8], sizes = [128, 8], strides = [1, 1]} : vector<128x64xf32> to vector<128x8xf32>
    %c0_77 = arith.constant 0 : index
    %c1_78 = arith.constant 1 : index
    %c0_79 = arith.constant 0 : index
    %c0_80 = arith.constant 0 : index
    %81 = vector.load %arg10[%c0_77, %c1_78, %c0_79, %c0_80] : memref<1x8x128x8xf32, #tpu.memory_space<vmem>>, vector<1x1x128x8xf32>
    %82 = vector.shape_cast %81 : vector<1x1x128x8xf32> to vector<128x8xf32>
    %83 = vector.shape_cast %80 : vector<128x8xf32> to vector<1x1x128x8xf32>
    tpu.vector_store %arg10[%c0_77, %c1_78, %c0_79, %c0_80], %83 {strides = array<i32>} : memref<1x8x128x8xf32, #tpu.memory_space<vmem>>, vector<1x1x128x8xf32>,
    %84 = vector.extract_strided_slice %75 {offsets = [0, 16], sizes = [128, 8], strides = [1, 1]} : vector<128x64xf32> to vector<128x8xf32>
    %c0_81 = arith.constant 0 : index
    %c2_82 = arith.constant 2 : index
    %c0_83 = arith.constant 0 : index
    %c0_84 = arith.constant 0 : index
    %85 = vector.load %arg10[%c0_81, %c2_82, %c0_83, %c0_84] : memref<1x8x128x8xf32, #tpu.memory_space<vmem>>, vector<1x1x128x8xf32>
    %86 = vector.shape_cast %85 : vector<1x1x128x8xf32> to vector<128x8xf32>
    %87 = vector.shape_cast %84 : vector<128x8xf32> to vector<1x1x128x8xf32>
    tpu.vector_store %arg10[%c0_81, %c2_82, %c0_83, %c0_84], %87 {strides = array<i32>} : memref<1x8x128x8xf32, #tpu.memory_space<vmem>>, vector<1x1x128x8xf32>,
    %88 = vector.extract_strided_slice %75 {offsets = [0, 24], sizes = [128, 8], strides = [1, 1]} : vector<128x64xf32> to vector<128x8xf32>
    %c0_85 = arith.constant 0 : index
    %c3_86 = arith.constant 3 : index
    %c0_87 = arith.constant 0 : index
    %c0_88 = arith.constant 0 : index
    %89 = vector.load %arg10[%c0_85, %c3_86, %c0_87, %c0_88] : memref<1x8x128x8xf32, #tpu.memory_space<vmem>>, vector<1x1x128x8xf32>
    %90 = vector.shape_cast %89 : vector<1x1x128x8xf32> to vector<128x8xf32>
    %91 = vector.shape_cast %88 : vector<128x8xf32> to vector<1x1x128x8xf32>
    tpu.vector_store %arg10[%c0_85, %c3_86, %c0_87, %c0_88], %91 {strides = array<i32>} : memref<1x8x128x8xf32, #tpu.memory_space<vmem>>, vector<1x1x128x8xf32>,
    %92 = vector.extract_strided_slice %75 {offsets = [0, 32], sizes = [128, 8], strides = [1, 1]} : vector<128x64xf32> to vector<128x8xf32>
    %c0_89 = arith.constant 0 : index
    %c4_90 = arith.constant 4 : index
    %c0_91 = arith.constant 0 : index
    %c0_92 = arith.constant 0 : index
    %93 = vector.load %arg10[%c0_89, %c4_90, %c0_91, %c0_92] : memref<1x8x128x8xf32, #tpu.memory_space<vmem>>, vector<1x1x128x8xf32>
    %94 = vector.shape_cast %93 : vector<1x1x128x8xf32> to vector<128x8xf32>
    %95 = vector.shape_cast %92 : vector<128x8xf32> to vector<1x1x128x8xf32>
    tpu.vector_store %arg10[%c0_89, %c4_90, %c0_91, %c0_92], %95 {strides = array<i32>} : memref<1x8x128x8xf32, #tpu.memory_space<vmem>>, vector<1x1x128x8xf32>,
    %96 = vector.extract_strided_slice %75 {offsets = [0, 40], sizes = [128, 8], strides = [1, 1]} : vector<128x64xf32> to vector<128x8xf32>
    %c0_93 = arith.constant 0 : index
    %c5_94 = arith.constant 5 : index
    %c0_95 = arith.constant 0 : index
    %c0_96 = arith.constant 0 : index
    %97 = vector.load %arg10[%c0_93, %c5_94, %c0_95, %c0_96] : memref<1x8x128x8xf32, #tpu.memory_space<vmem>>, vector<1x1x128x8xf32>
    %98 = vector.shape_cast %97 : vector<1x1x128x8xf32> to vector<128x8xf32>
    %99 = vector.shape_cast %96 : vector<128x8xf32> to vector<1x1x128x8xf32>
    tpu.vector_store %arg10[%c0_93, %c5_94, %c0_95, %c0_96], %99 {strides = array<i32>} : memref<1x8x128x8xf32, #tpu.memory_space<vmem>>, vector<1x1x128x8xf32>,
    %100 = vector.extract_strided_slice %75 {offsets = [0, 48], sizes = [128, 8], strides = [1, 1]} : vector<128x64xf32> to vector<128x8xf32>
    %c0_97 = arith.constant 0 : index
    %c6_98 = arith.constant 6 : index
    %c0_99 = arith.constant 0 : index
    %c0_100 = arith.constant 0 : index
    %101 = vector.load %arg10[%c0_97, %c6_98, %c0_99, %c0_100] : memref<1x8x128x8xf32, #tpu.memory_space<vmem>>, vector<1x1x128x8xf32>
    %102 = vector.shape_cast %101 : vector<1x1x128x8xf32> to vector<128x8xf32>
    %103 = vector.shape_cast %100 : vector<128x8xf32> to vector<1x1x128x8xf32>
    tpu.vector_store %arg10[%c0_97, %c6_98, %c0_99, %c0_100], %103 {strides = array<i32>} : memref<1x8x128x8xf32, #tpu.memory_space<vmem>>, vector<1x1x128x8xf32>,
    %104 = vector.extract_strided_slice %75 {offsets = [0, 56], sizes = [128, 8], strides = [1, 1]} : vector<128x64xf32> to vector<128x8xf32>
    %c0_101 = arith.constant 0 : index
    %c7_102 = arith.constant 7 : index
    %c0_103 = arith.constant 0 : index
    %c0_104 = arith.constant 0 : index
    %105 = vector.load %arg10[%c0_101, %c7_102, %c0_103, %c0_104] : memref<1x8x128x8xf32, #tpu.memory_space<vmem>>, vector<1x1x128x8xf32>
    %106 = vector.shape_cast %105 : vector<1x1x128x8xf32> to vector<128x8xf32>
    %107 = vector.shape_cast %104 : vector<128x8xf32> to vector<1x1x128x8xf32>
    tpu.vector_store %arg10[%c0_101, %c7_102, %c0_103, %c0_104], %107 {strides = array<i32>} : memref<1x8x128x8xf32, #tpu.memory_space<vmem>>, vector<1x1x128x8xf32>,
    return
  }
  func.func @transform_0(%arg0: i32, %arg1: i32) -> (i32, i32, i32) {
    %c0_i32 = arith.constant 0 : i32
    %c0_i32_0 = arith.constant 0 : i32
    return %arg0, %arg1, %c0_i32 : i32, i32, i32
  }
  func.func @transform_1(%arg0: i32, %arg1: i32) -> (i32, i32, i32) {
    %c0_i32 = arith.constant 0 : i32
    %c0_i32_0 = arith.constant 0 : i32
    return %arg0, %arg1, %c0_i32 : i32, i32, i32
  }
  func.func @transform_2(%arg0: i32, %arg1: i32) -> (i32, i32, i32) {
    %c0_i32 = arith.constant 0 : i32
    %c0_i32_0 = arith.constant 0 : i32
    return %arg0, %arg1, %c0_i32 : i32, i32, i32
  }
  func.func @transform_3(%arg0: i32, %arg1: i32) -> (i32, i32) {
    %c0_i32 = arith.constant 0 : i32
    %c0_i32_0 = arith.constant 0 : i32
    %c0_i32_1 = arith.constant 0 : i32
    return %c0_i32, %c0_i32_0 : i32, i32
  }
  func.func @transform_4(%arg0: i32, %arg1: i32) -> (i32, i32) {
    %c0_i32 = arith.constant 0 : i32
    %c0_i32_0 = arith.constant 0 : i32
    %c0_i32_1 = arith.constant 0 : i32
    return %c0_i32, %c0_i32_0 : i32, i32
  }
  func.func @transform_5(%arg0: i32, %arg1: i32) -> (i32, i32) {
    %c0_i32 = arith.constant 0 : i32
    %c0_i32_0 = arith.constant 0 : i32
    %c0_i32_1 = arith.constant 0 : i32
    return %c0_i32, %c0_i32_0 : i32, i32
  }
  func.func @transform_6(%arg0: i32, %arg1: i32) -> (i32, i32, i32, i32) {
    %c0_i32 = arith.constant 0 : i32
    %c0_i32_0 = arith.constant 0 : i32
    %c0_i32_1 = arith.constant 0 : i32
    return %arg0, %c0_i32, %arg1, %c0_i32_0 : i32, i32, i32, i32
  }
  func.func @transform_7(%arg0: i32, %arg1: i32) -> (i32, i32, i32, i32) {
    %c0_i32 = arith.constant 0 : i32
    %c0_i32_0 = arith.constant 0 : i32
    %c0_i32_1 = arith.constant 0 : i32
    return %arg0, %c0_i32, %arg1, %c0_i32_0 : i32, i32, i32, i32
  }
  func.func @transform_8(%arg0: i32, %arg1: i32) -> (i32, i32, i32, i32) {
    %c0_i32 = arith.constant 0 : i32
    %c0_i32_0 = arith.constant 0 : i32
    %c0_i32_1 = arith.constant 0 : i32
    return %arg0, %c0_i32, %arg1, %c0_i32_0 : i32, i32, i32, i32
  }
}

</mosaic_0001>

<bundles_post_ra>
// kernel: tpu_custom_call.1
= control target key start
LH: loop header
LB: loop body
LE: loop exit
PB: predicated region body
PF: predicated region fallthrough
CT: control target
= control target key end

     0   :  { %s3565_s27 = smov 0   ;;  %s3567_s28 = smov 0   ;;  %s5330_s0 = inlined_call_operand.vmem [shape: f32[2,128,64], index: 0, kind: input, shape index: {}]   ;;  %s5331_s1 = inlined_call_operand.vmem [shape: f32[2,128,64], index: 1, kind: input, shape index: {}]   ;;  %s5332_s2 = inlined_call_operand.vmem [shape: f32[2,128,64], index: 2, kind: input, shape index: {}]   ;;  %s5333_s3 = inlined_call_operand.vmem [shape: f32[64,64], index: 3, kind: input, shape index: {}]   ;;  %s5334_s4 = inlined_call_operand.vmem [shape: f32[64,64], index: 4, kind: input, shape index: {}]   ;;  %s5335_s5 = inlined_call_operand.vmem [shape: f32[64,64], index: 5, kind: input, shape index: {}]   ;;  %s5336_s6 = inlined_call_operand.vmem [shape: f32[2,8,128,8], index: 6, kind: output, shape index: {0}]   ;;  %s5337_s7 = inlined_call_operand.vmem [shape: f32[2,8,128,8], index: 7, kind: output, shape index: {1}]   ;;  %s5338_s8 = inlined_call_operand.vmem [shape: f32[2,8,128,8], index: 8, kind: output, shape index: {2}]  }
   0x1   :  { %s3569_s29 = smov 0  }
   0x2 LB: > { %s31_s30 = sadd.s32 1, %s3507_s28  ;;  %p2805_p0 = scmp.ge.s32.totalorder %s3511_s29, 1  ;;  %s3511_s29 = sphi %s3569_s29, %s19_s29   ;;  %s3507_s28 = sphi %s3567_s28, %s5340_s28   ;;  %s3503_s27 = sphi %s3565_s27, %s5339_s27  }
   0x3   : > { %p33_p1 = scmp.ge.s32.totalorder %s31_s30, 2  ;;  %p326_p2 = scmp.lt.s32.totalorder %s3511_s29, 3 }
   0x5   : > { %s5342_s30 = smov (%p33_p1, %s31_s30), 0  ;;  %p327_p3 = pnand %p2805_p0, %p326_p2 }
   0x6   : > { %v480_v0 = vld [vmem:[%s5333_s3] sm:$0xff] (!%p327_p3)  ;;  %v481_v1 = vld [vmem:[%s5333_s3 + $0x8] sm:$0xff] (!%p327_p3)  ;;  %v482_v2 = vld [vmem:[%s5333_s3 + $0x10] sm:$0xff] (!%p327_p3)  ;;  %p405_p4 = scmp.lt.s32.totalorder (!%p327_p3), %s3503_s27, 1  ;;  %vm488_vm0 = vcmask (!%p327_p3), 523264   ;;  %vm682_vm1 = vcmask (!%p327_p3), 64512  }
   0x7   : > { %330 = sbr.rel (%p327_p3) target bundleno = 1022 (0x3fe), region = 44  ;;  %v3402_v3 = vpack.c.bf16 (!%p327_p3), %v481_v1, %v480_v0  ;;  %v483_v4 = vld [vmem:[%s5333_s3 + $0x18] sm:$0xff] (!%p327_p3)  ;;  %v484_v6 = vld [vmem:[%s5333_s3 + $0x20] sm:$0xff] (!%p327_p3)  ;;  %v485_v7 = vld [vmem:[%s5333_s3 + $0x28] sm:$0xff] (!%p327_p3)  ;;  %s3514_s17 = smov (!%p327_p3), 112  }
   0x8   : > { %v3406_v5 = vpack.c.bf16 (!%p327_p3), %v483_v4, %v482_v2  ;;  %v3410_v8 = vpack.c.bf16 (!%p327_p3), %v485_v7, %v484_v6  ;;  %v486_v9 = vld [vmem:[%s5333_s3 + $0x30] sm:$0xff] (!%p327_p3)  ;;  %v487_v10 = vld [vmem:[%s5333_s3 + $0x38] sm:$0xff] (!%p327_p3)  ;;  %v1186_v14 = vld [vmem:[%s5334_s4] sm:$0xff] (!%p327_p3)  ;;  %s3515_s18 = smov (!%p327_p3), 104   ;;  %s3516_s19 = smov (!%p327_p3), 96  }
   0x9   : > { %3403 = vmatprep.subr.bf16.mxu0 (!%p327_p3), %v3402_v3  ;;  %3450 = vmatprep.subr.bf16.mxu1 (!%p327_p3), %v3402_v3  ;;  %v3414_v13 = vpack.c.bf16 (!%p327_p3), %v487_v10, %v486_v9  ;;  %v1187_v15 = vld [vmem:[%s5334_s4 + $0x8] sm:$0xff] (!%p327_p3)  ;;  %v1188_v17 = vld [vmem:[%s5334_s4 + $0x10] sm:$0xff] (!%p327_p3)  ;;  %v1189_v18 = vld [vmem:[%s5334_s4 + $0x18] sm:$0xff] (!%p327_p3)  ;;  %s3517_s20 = smov (!%p327_p3), 88   ;;  %s3518_s22 = smov (!%p327_p3), 80  }
   0xa   : > { %3405 = vmatpush3.bf16.msra.mxu0 (!%p327_p3), %v3402_v3  ;;  %3454 = vmatpush3.bf16.msra.mxu1 (!%p327_p3), %v3402_v3  ;;  %v3418_v16 = vpack.c.bf16 (!%p327_p3), %v1187_v15, %v1186_v14  ;;  %v3422_v23 = vpack.c.bf16 (!%p327_p3), %v1189_v18, %v1188_v17  ;;  %v1190_v34 = vld [vmem:[%s5334_s4 + $0x20] sm:$0xff] (!%p327_p3)  ;;  %v1191_v35 = vld [vmem:[%s5334_s4 + $0x28] sm:$0xff] (!%p327_p3)  ;;  %v1192_v37 = vld [vmem:[%s5334_s4 + $0x30] sm:$0xff] (!%p327_p3)  ;;  %s3519_s23 = smov (!%p327_p3), 72  }
   0xb   : > { %3407 = vmatprep.subr.bf16.mxu0 (!%p327_p3), %v3406_v5  ;;  %3451 = vmatprep.subr.bf16.mxu1 (!%p327_p3), %v3406_v5  ;;  %v3426_v36 = vpack.c.bf16 (!%p327_p3), %v1191_v35, %v1190_v34  ;;  %v1193_v38 = vld [vmem:[%s5334_s4 + $0x38] sm:$0xff] (!%p327_p3)  ;;  %v1891_v9 = vld [vmem:[%s5335_s5 + $0x8] sm:$0xff] (!%p327_p3) }
   0xc   : > { %v3430_v39 = vpack.c.bf16 (!%p327_p3), %v1193_v38, %v1192_v37  ;;  %v1895_v17 = vld [vmem:[%s5335_s5 + $0x28] sm:$0xff] (!%p327_p3) }
   0xe   : > { %s5344_s27 = smov (!%p405_p4, %s3503_s27), 1  ;;  %3409 = vmatpush3.bf16.msra.mxu0 %v3406_v5  ;;  %3455 = vmatpush3.bf16.msra.mxu1 %v3406_v5 }
   0xf   : > { %s3604_s21 = sshll.u32 %s5344_s27, 7  ;;  %3411 = vmatprep.subr.bf16.mxu0 %v3410_v8  ;;  %3452 = vmatprep.subr.bf16.mxu1 %v3410_v8  ;;  %s3695_s13 = sshll.u32 %s5344_s27, 10 }
  0x10   : > { %s3613_s26 = scalar_lea.vmem %s5330_s0, %s3604_s21  ;;  %s422_s12 = scalar_lea.vmem %s5331_s1, %s3604_s21 }
  0x11   : > { %v464_v11 = vld [vmem:[%s3613_s26] sm:$0xff]  ;;  %v465_v19 = vld [vmem:[%s3613_s26 + $0x8] sm:$0xff]  ;;  %v466_v21 = vld [vmem:[%s3613_s26 + $0x10] sm:$0xff]  ;;  %s3701_s16 = scalar_lea.vmem %s5336_s6, %s3695_s13  ;;  %s3513_s27 = smov 120  }
  0x12   : > { %v472_v12 = vld [vmem:[%s3613_s26 + $0x40] sm:$0xff]  ;;  %3298 = vmatprep.mubr.msk.f32.mxu0 %vm488_vm0, %v464_v11  ;;  %3413 = vmatpush3.bf16.msra.mxu0 %v3410_v8  ;;  %v473_v20 = vld [vmem:[%s3613_s26 + $0x48] sm:$0xff]  ;;  %v474_v22 = vld [vmem:[%s3613_s26 + $0x50] sm:$0xff]  ;;  %s3855_s25 = scalar_lea.vmem %s5337_s7, %s3695_s13  ;;  %s3901_s10 = scalar_lea.vmem %s5332_s2, %s3604_s21 }
  0x13   : > { %3310 = vmatprep.mubr.msk.f32.mxu1 %vm488_vm0, %v472_v12  ;;  %3456 = vmatpush3.bf16.msra.mxu1 %v3410_v8  ;;  %v467_v24 = vld [vmem:[%s3613_s26 + $0x18] sm:$0xff]  ;;  %v468_v26 = vld [vmem:[%s3613_s26 + $0x20] sm:$0xff]  ;;  %v469_v28 = vld [vmem:[%s3613_s26 + $0x28] sm:$0xff] }
  0x14   : > { %3415 = vmatprep.subr.bf16.mxu0 %v3414_v13  ;;  %3453 = vmatprep.subr.bf16.mxu1 %v3414_v13  ;;  %v475_v25 = vld [vmem:[%s3613_s26 + $0x58] sm:$0xff]  ;;  %v476_v27 = vld [vmem:[%s3613_s26 + $0x60] sm:$0xff]  ;;  %v477_v29 = vld [vmem:[%s3613_s26 + $0x68] sm:$0xff] }
  0x15   : > { %v470_v30 = vld [vmem:[%s3613_s26 + $0x30] sm:$0xff]  ;;  %v471_v32 = vld [vmem:[%s3613_s26 + $0x38] sm:$0xff]  ;;  %v1170_v40 = vld [vmem:[%s422_s12] sm:$0xff] }
  0x16   : > { %3417 = vmatpush3.bf16.msra.mxu0 %v3414_v13  ;;  %v478_v31 = vld [vmem:[%s3613_s26 + $0x70] sm:$0xff]  ;;  %v479_v33 = vld [vmem:[%s3613_s26 + $0x78] sm:$0xff]  ;;  %v1171_v41 = vld [vmem:[%s422_s12 + $0x8] sm:$0xff] }
  0x17   : > { %3457 = vmatpush3.bf16.msra.mxu1 %v3414_v13  ;;  %v1172_v42 = vld [vmem:[%s422_s12 + $0x10] sm:$0xff]  ;;  %v1173_v43 = vld [vmem:[%s422_s12 + $0x18] sm:$0xff]  ;;  %v1174_v44 = vld [vmem:[%s422_s12 + $0x20] sm:$0xff] }
  0x18   : > { %3419 = vmatprep.subr.bf16.mxu1 %v3418_v16  ;;  %v1175_v45 = vld [vmem:[%s422_s12 + $0x28] sm:$0xff]  ;;  %v1176_v46 = vld [vmem:[%s422_s12 + $0x30] sm:$0xff]  ;;  %v1177_v47 = vld [vmem:[%s422_s12 + $0x38] sm:$0xff] }
  0x19   : > { %3299 = vmatmul.mubr.msk.f32.vlgmr.msra.gmra.mrb[0].mxu0 %vm488_vm0, %v465_v19  ;;  %v1178_v48 = vld [vmem:[%s422_s12 + $0x40] sm:$0xff]  ;;  %v1179_v49 = vld [vmem:[%s422_s12 + $0x48] sm:$0xff]  ;;  %v1180_v50 = vld [vmem:[%s422_s12 + $0x50] sm:$0xff] }
  0x1a   : > { %3311 = vmatmul.mubr.msk.f32.vlgmr.msra.gmra.mrb[0].mxu1 %vm488_vm0, %v473_v20  ;;  %3301 = vmatprep.mubr.msk.f32.mxu0 %vm488_vm0, %v466_v21  ;;  %v1181_v51 = vld [vmem:[%s422_s12 + $0x58] sm:$0xff]  ;;  %v1182_v52 = vld [vmem:[%s422_s12 + $0x60] sm:$0xff]  ;;  %v1183_v53 = vld [vmem:[%s422_s12 + $0x68] sm:$0xff] }
  0x1b   : > { %3313 = vmatprep.mubr.msk.f32.mxu1 %vm488_vm0, %v474_v22  ;;  %3421 = vmatpush3.bf16.msra.mxu1 %v3418_v16  ;;  %v1184_v54 = vld [vmem:[%s422_s12 + $0x70] sm:$0xff]  ;;  %v1185_v55 = vld [vmem:[%s422_s12 + $0x78] sm:$0xff]  ;;  %v1890_v8 = vld [vmem:[%s5335_s5] sm:$0xff]  ;;  %s4419_s12 = scalar_lea.vmem %s5338_s8, %s3695_s13 }
  0x1c   : > { %3423 = vmatprep.subr.bf16.mxu1 %v3422_v23  ;;  %v3434_v10 = vpack.c.bf16 %v1891_v9, %v1890_v8  ;;  %v1892_v11 = vld [vmem:[%s5335_s5 + $0x10] sm:$0xff]  ;;  %v1893_v12 = vld [vmem:[%s5335_s5 + $0x18] sm:$0xff]  ;;  %v1894_v16 = vld [vmem:[%s5335_s5 + $0x20] sm:$0xff] }
  0x1d   : > { %3302 = vmatmul.mubr.msk.f32.gmra.mrb[2].mxu0 %vm488_vm0, %v467_v24  ;;  %v3438_v13 = vpack.c.bf16 %v1893_v12, %v1892_v11  ;;  %v3442_v18 = vpack.c.bf16 %v1895_v17, %v1894_v16  ;;  %v1896_v19 = vld [vmem:[%s5335_s5 + $0x30] sm:$0xff]  ;;  %v1897_v20 = vld [vmem:[%s5335_s5 + $0x38] sm:$0xff]  ;;  %v1874_v24 = vld [vmem:[%s3901_s10] sm:$0xff] }
  0x1e   : > { %3314 = vmatmul.mubr.msk.f32.gmra.mrb[2].mxu1 %vm488_vm0, %v475_v25  ;;  %3304 = vmatprep.mubr.msk.f32.mxu0 %vm488_vm0, %v468_v26  ;;  %v3446_v21 = vpack.c.bf16 %v1897_v20, %v1896_v19  ;;  %v1875_v25 = vld [vmem:[%s3901_s10 + $0x8] sm:$0xff]  ;;  %v1876_v26 = vld [vmem:[%s3901_s10 + $0x10] sm:$0xff]  ;;  %v1881_v35 = vld [vmem:[%s3901_s10 + $0x38] sm:$0xff] }
  0x1f   : > { %3316 = vmatprep.mubr.msk.f32.mxu1 %vm488_vm0, %v476_v27  ;;  %3425 = vmatpush3.bf16.msra.mxu1 %v3422_v23  ;;  %v1877_v27 = vld [vmem:[%s3901_s10 + $0x18] sm:$0xff]  ;;  %v1880_v34 = vld [vmem:[%s3901_s10 + $0x30] sm:$0xff] }
  0x20   : > { %3427 = vmatprep.subr.bf16.mxu1 %v3426_v36  ;;  %3435 = vmatprep.subr.bf16.mxu0 %v3434_v10 }
  0x21   : > { %3305 = vmatmul.mubr.msk.f32.gmra.mrb[4].mxu0 %vm488_vm0, %v469_v28 }
  0x22   : > { %3317 = vmatmul.mubr.msk.f32.gmra.mrb[4].mxu1 %vm488_vm0, %v477_v29  ;;  %3307 = vmatprep.mubr.msk.f32.mxu0 %vm488_vm0, %v470_v30  ;;  %v1878_v30 = vld [vmem:[%s3901_s10 + $0x20] sm:$0xff] }
  0x23   : > { %3319 = vmatprep.mubr.msk.f32.mxu1 %vm488_vm0, %v478_v31  ;;  %3429 = vmatpush3.bf16.msra.mxu1 %v3426_v36  ;;  %v1879_v31 = vld [vmem:[%s3901_s10 + $0x28] sm:$0xff] }
  0x24   : > { %3431 = vmatprep.subr.bf16.mxu1 %v3430_v39  ;;  %3437 = vmatpush3.bf16.msra.mxu0 %v3434_v10 }
  0x25   : > { %3308 = vmatmul.mubr.msk.f32.gmra.mrb[6].mxu0 %vm488_vm0, %v471_v32  ;;  %3439 = vmatprep.subr.bf16.mxu0 %v3438_v13 }
  0x26   : > { %3320 = vmatmul.mubr.msk.f32.gmra.mrb[6].mxu1 %vm488_vm0, %v479_v33  ;;  %3378 = vmatprep.mubr.msk.f32.mxu0 %vm488_vm0, %v1874_v24 }
  0x27   : > { %3433 = vmatpush3.bf16.msra.mxu1 %v3430_v39  ;;  %3338 = vmatprep.mubr.msk.f32.mxu1 %vm488_vm0, %v1170_v40  ;;  %v1882_v40 = vld [vmem:[%s3901_s10 + $0x40] sm:$0xff] }
  0x28   : > { %3441 = vmatpush3.bf16.msra.mxu0 %v3438_v13 }
  0x29   : > { %3443 = vmatprep.subr.bf16.mxu0 %v3442_v18 }
  0x2a   : > { %3339 = vmatmul.mubr.msk.f32.vlgmr.msra.gmra.mrb[8].mxu1 %vm488_vm0, %v1171_v41  ;;  %v1883_v41 = vld [vmem:[%s3901_s10 + $0x48] sm:$0xff] }
  0x2b   : > { %3341 = vmatprep.mubr.msk.f32.mxu1 %vm488_vm0, %v1172_v42 }
  0x2c   : > { %3445 = vmatpush3.bf16.msra.mxu0 %v3442_v18 }
  0x2d   : > { %3447 = vmatprep.subr.bf16.mxu0 %v3446_v21 }
  0x2e   : > { %3342 = vmatmul.mubr.msk.f32.gmra.mrb[10].mxu1 %vm488_vm0, %v1173_v43 }
  0x2f   : > { %3344 = vmatprep.mubr.msk.f32.mxu1 %vm488_vm0, %v1174_v44  ;;  %v1884_v44 = vld [vmem:[%s3901_s10 + $0x50] sm:$0xff] }
  0x30   : > { %3449 = vmatpush3.bf16.msra.mxu0 %v3446_v21 }
  0x32   : > { %3345 = vmatmul.mubr.msk.f32.gmra.mrb[12].mxu1 %vm488_vm0, %v1175_v45  ;;  %v1885_v45 = vld [vmem:[%s3901_s10 + $0x58] sm:$0xff] }
  0x33   : > { %3347 = vmatprep.mubr.msk.f32.mxu1 %vm488_vm0, %v1176_v46  ;;  %3379 = vmatmul.mubr.msk.f32.vlgmr.msra.gmra.mrb[8].mxu0 %vm488_vm0, %v1875_v25 }
  0x34   : > { %3381 = vmatprep.mubr.msk.f32.mxu0 %vm488_vm0, %v1876_v26 }
  0x36   : > { %3348 = vmatmul.mubr.msk.f32.gmra.mrb[14].mxu1 %vm488_vm0, %v1177_v47 }
  0x37   : > { %3350 = vmatprep.mubr.msk.f32.mxu1 %vm488_vm0, %v1178_v48  ;;  %3382 = vmatmul.mubr.msk.f32.gmra.mrb[10].mxu0 %vm488_vm0, %v1877_v27 }
  0x38   : > { %3384 = vmatprep.mubr.msk.f32.mxu0 %vm488_vm0, %v1878_v30 }
  0x3a   : > { %3351 = vmatmul.mubr.msk.f32.gmra.mrb[16].mxu1 %vm488_vm0, %v1179_v49 }
  0x3b   : > { %3353 = vmatprep.mubr.msk.f32.mxu1 %vm488_vm0, %v1180_v50  ;;  %3385 = vmatmul.mubr.msk.f32.gmra.mrb[12].mxu0 %vm488_vm0, %v1879_v31  ;;  %v1886_v50 = vld [vmem:[%s3901_s10 + $0x60] sm:$0xff] }
  0x3c   : > { %3387 = vmatprep.mubr.msk.f32.mxu0 %vm488_vm0, %v1880_v34 }
  0x3e   : > { %3354 = vmatmul.mubr.msk.f32.gmra.mrb[18].mxu1 %vm488_vm0, %v1181_v51  ;;  %v1887_v51 = vld [vmem:[%s3901_s10 + $0x68] sm:$0xff] }
  0x3f   : > { %3356 = vmatprep.mubr.msk.f32.mxu1 %vm488_vm0, %v1182_v52  ;;  %3388 = vmatmul.mubr.msk.f32.gmra.mrb[14].mxu0 %vm488_vm0, %v1881_v35 }
  0x40   : > { %3390 = vmatprep.mubr.msk.f32.mxu0 %vm488_vm0, %v1882_v40 }
  0x42   : > { %3357 = vmatmul.mubr.msk.f32.gmra.mrb[20].mxu1 %vm488_vm0, %v1183_v53 }
  0x43   : > { %3359 = vmatprep.mubr.msk.f32.mxu1 %vm488_vm0, %v1184_v54  ;;  %3391 = vmatmul.mubr.msk.f32.gmra.mrb[16].mxu0 %vm488_vm0, %v1883_v41  ;;  %v1888_v54 = vld [vmem:[%s3901_s10 + $0x70] sm:$0xff] }
  0x44   : > { %3393 = vmatprep.mubr.msk.f32.mxu0 %vm488_vm0, %v1884_v44 }
  0x46   : > { %3360 = vmatmul.mubr.msk.f32.gmra.mrb[22].mxu1 %vm488_vm0, %v1185_v55  ;;  %v1889_v55 = vld [vmem:[%s3901_s10 + $0x78] sm:$0xff] }
  0x47   : > { %3394 = vmatmul.mubr.msk.f32.gmra.mrb[18].mxu0 %vm488_vm0, %v1885_v45 }
  0x48   : > { %3396 = vmatprep.mubr.msk.f32.mxu0 %vm488_vm0, %v1886_v50 }
  0x4b   : > { %3397 = vmatmul.mubr.msk.f32.gmra.mrb[20].mxu0 %vm488_vm0, %v1887_v51 }
  0x4c   : > { %3399 = vmatprep.mubr.msk.f32.mxu0 %vm488_vm0, %v1888_v54 }
  0x4f   : > { %3400 = vmatmul.mubr.msk.f32.gmra.mrb[22].mxu0 %vm488_vm0, %v1889_v55 }
  0xec   : > { %v3300_v56 = vpop.f32.mrb[0].mxu0 }
  0xed   : > { %v3312_v57 = vpop.f32.mrb[0].mxu1  ;;  %684 = vst.msk [vmem:[%s3701_s16 + $0x8] sm:$0xff] %vm682_vm1, %v3300_v56  ;;  %717 = vrot.lane.b32.xlu0 %v3300_v56, %s3513_s27  ;;  %v603_v59 = vpop.f32.mrb[1].mxu0 }
  0xee   : > { %692 = vst.msk [vmem:[%s3701_s16 + $0x48] sm:$0xff] %vm682_vm1, %v3312_v57  ;;  %733 = vrot.lane.b32.xlu1 %v3312_v57, %s3513_s27  ;;  %v643_v58 = vpop.f32.mrb[1].mxu1  ;;  %683 = vst.msk [vmem:[%s3701_s16] sm:$0xff] %vm682_vm1, %v603_v59 }
  0xef   : > { %691 = vst.msk [vmem:[%s3701_s16 + $0x40] sm:$0xff] %vm682_vm1, %v643_v58 }
  0xf0   : > { %v3713_v60 = vpop.f32.mrb[2].mxu0 }
  0xf1   : > { %v3715_v61 = vpop.f32.mrb[2].mxu1  ;;  %715 = vrot.lane.b32.xlu0 %v603_v59, %s3513_s27  ;;  %686 = vst.msk [vmem:[%s3701_s16 + $0x18] sm:$0xff] %vm682_vm1, %v3713_v60  ;;  %v3722_v62 = vpop.f32.mrb[3].mxu0 }
  0xf2   : > { %782 = vrot.lane.b32.xlu1 %v3300_v56, %s3514_s17  ;;  %694 = vst.msk [vmem:[%s3701_s16 + $0x58] sm:$0xff] %vm682_vm1, %v3715_v61  ;;  %v3727_v63 = vpop.f32.mrb[3].mxu1  ;;  %685 = vst.msk [vmem:[%s3701_s16 + $0x10] sm:$0xff] %vm682_vm1, %v3722_v62 }
  0xf3   : > { %693 = vst.msk [vmem:[%s3701_s16 + $0x50] sm:$0xff] %vm682_vm1, %v3727_v63 }
  0xf4   : > { %v3735_v0 = vpop.f32.mrb[4].mxu0 }
  0xf5   : > { %v3737_v1 = vpop.f32.mrb[4].mxu1  ;;  %731 = vrot.lane.b32.xlu0 %v643_v58, %s3513_s27  ;;  %688 = vst.msk [vmem:[%s3701_s16 + $0x28] sm:$0xff] %vm682_vm1, %v3735_v0  ;;  %v3744_v2 = vpop.f32.mrb[5].mxu0 }
  0xf6   : > { %798 = vrot.lane.b32.xlu1 %v3312_v57, %s3514_s17  ;;  %696 = vst.msk [vmem:[%s3701_s16 + $0x68] sm:$0xff] %vm682_vm1, %v3737_v1  ;;  %v3749_v3 = vpop.f32.mrb[5].mxu1  ;;  %687 = vst.msk [vmem:[%s3701_s16 + $0x20] sm:$0xff] %vm682_vm1, %v3744_v2 }
  0xf7   : > { %695 = vst.msk [vmem:[%s3701_s16 + $0x60] sm:$0xff] %vm682_vm1, %v3749_v3 }
  0xf8   : > { %v3771_v4 = vpop.f32.mrb[6].mxu0 }
  0xf9   : > { %780 = vrot.lane.b32.xlu0 %v603_v59, %s3514_s17  ;;  %690 = vst.msk [vmem:[%s3701_s16 + $0x38] sm:$0xff] %vm682_vm1, %v3771_v4  ;;  %v3776_v5 = vpop.f32.mrb[7].mxu0  ;;  %v3783_v6 = vpop.f32.mrb[6].mxu1 }
  0xfa   : > { %847 = vrot.lane.b32.xlu1 %v3300_v56, %s3515_s18  ;;  %689 = vst.msk [vmem:[%s3701_s16 + $0x30] sm:$0xff] %vm682_vm1, %v3776_v5  ;;  %698 = vst.msk [vmem:[%s3701_s16 + $0x78] sm:$0xff] %vm682_vm1, %v3783_v6  ;;  %v3788_v7 = vpop.f32.mrb[7].mxu1 }
  0xfb   : > { %697 = vst.msk [vmem:[%s3701_s16 + $0x70] sm:$0xff] %vm682_vm1, %v3788_v7 }
  0xfd   : > { %796 = vrot.lane.b32.xlu0 %v643_v58, %s3514_s17  ;;  %v3857_v14 = vpop.f32.mrb[8].mxu1 }
  0xfe   : > { %863 = vrot.lane.b32.xlu1 %v3312_v57, %s3515_s18  ;;  %1388 = vst.msk [vmem:[%s3855_s25 + $0x8] sm:$0xff] %vm682_vm1, %v3857_v14  ;;  %v3862_v15 = vpop.f32.mrb[9].mxu1 }
  0xff   : > { %1387 = vst.msk [vmem:[%s3855_s25] sm:$0xff] %vm682_vm1, %v3862_v15 }
 0x101   : > { %845 = vrot.lane.b32.xlu0 %v603_v59, %s3515_s18  ;;  %v3887_v22 = vpop.f32.mrb[10].mxu1 }
 0x102   : > { %912 = vrot.lane.b32.xlu1 %v3300_v56, %s3516_s19  ;;  %1390 = vst.msk [vmem:[%s3855_s25 + $0x18] sm:$0xff] %vm682_vm1, %v3887_v22  ;;  %v3892_v23 = vpop.f32.mrb[11].mxu1 }
 0x103   : > { %1389 = vst.msk [vmem:[%s3855_s25 + $0x10] sm:$0xff] %vm682_vm1, %v3892_v23 }
 0x105   : > { %861 = vrot.lane.b32.xlu0 %v643_v58, %s3515_s18  ;;  %v3917_v28 = vpop.f32.mrb[12].mxu1 }
 0x106   : > { %928 = vrot.lane.b32.xlu1 %v3312_v57, %s3516_s19  ;;  %1392 = vst.msk [vmem:[%s3855_s25 + $0x28] sm:$0xff] %vm682_vm1, %v3917_v28  ;;  %v3923_v29 = vpop.f32.mrb[13].mxu1 }
 0x107   : > { %1391 = vst.msk [vmem:[%s3855_s25 + $0x20] sm:$0xff] %vm682_vm1, %v3923_v29 }
 0x109   : > { %910 = vrot.lane.b32.xlu0 %v603_v59, %s3516_s19  ;;  %v3947_v36 = vpop.f32.mrb[14].mxu1 }
 0x10a   : > { %977 = vrot.lane.b32.xlu1 %v3300_v56, %s3517_s20  ;;  %1394 = vst.msk [vmem:[%s3855_s25 + $0x38] sm:$0xff] %vm682_vm1, %v3947_v36  ;;  %v3958_v39 = vpop.f32.mrb[15].mxu1 }
 0x10b   : > { %1393 = vst.msk [vmem:[%s3855_s25 + $0x30] sm:$0xff] %vm682_vm1, %v3958_v39 }
 0x10d   : > { %926 = vrot.lane.b32.xlu0 %v643_v58, %s3516_s19  ;;  %v3981_v46 = vpop.f32.mrb[16].mxu1 }
 0x10e   : > { %993 = vrot.lane.b32.xlu1 %v3312_v57, %s3517_s20  ;;  %1396 = vst.msk [vmem:[%s3855_s25 + $0x48] sm:$0xff] %vm682_vm1, %v3981_v46  ;;  %v3992_v49 = vpop.f32.mrb[17].mxu1 }
 0x10f   : > { %1395 = vst.msk [vmem:[%s3855_s25 + $0x40] sm:$0xff] %vm682_vm1, %v3992_v49 }
 0x111   : > { %975 = vrot.lane.b32.xlu0 %v603_v59, %s3517_s20 }
 0x112   : > { %1042 = vrot.lane.b32.xlu1 %v3300_v56, %s3518_s22 }
 0x115   : > { %991 = vrot.lane.b32.xlu0 %v643_v58, %s3517_s20 }
 0x116   : > { %1058 = vrot.lane.b32.xlu1 %v3312_v57, %s3518_s22 }
 0x119   : > { %1040 = vrot.lane.b32.xlu0 %v603_v59, %s3518_s22 }
 0x11a   : > { %1107 = vrot.lane.b32.xlu1 %v3300_v56, %s3519_s23  ;;  %v4015_v56 = vpop.f32.mrb[18].mxu1 }
 0x11b   : > { %1398 = vst.msk [vmem:[%s3855_s25 + $0x58] sm:$0xff] %vm682_vm1, %v4015_v56 }
 0x11d   : > { %1056 = vrot.lane.b32.xlu0 %v643_v58, %s3518_s22 }
 0x11e   : > { %1123 = vrot.lane.b32.xlu1 %v3312_v57, %s3519_s23 }
 0x121   : > { %1105 = vrot.lane.b32.xlu0 %v603_v59, %s3519_s23  ;;  %v4026_v59 = vpop.f32.mrb[19].mxu1 }
 0x122   : > { %721 = vrot.lane.b32.xlu1 %v3713_v60, %s3513_s27  ;;  %1397 = vst.msk [vmem:[%s3855_s25 + $0x50] sm:$0xff] %vm682_vm1, %v4026_v59 }
 0x125   : > { %1121 = vrot.lane.b32.xlu0 %v643_v58, %s3519_s23 }
 0x126   : > { %737 = vrot.lane.b32.xlu1 %v3715_v61, %s3513_s27 }
 0x129   : > { %735 = vrot.lane.b32.xlu0 %v3727_v63, %s3513_s27 }
 0x12a   : > { %786 = vrot.lane.b32.xlu1 %v3713_v60, %s3514_s17 }
 0x12d   : > { %784 = vrot.lane.b32.xlu0 %v3722_v62, %s3514_s17 }
 0x12e   : > { %802 = vrot.lane.b32.xlu1 %v3715_v61, %s3514_s17 }
 0x131   : > { %800 = vrot.lane.b32.xlu0 %v3727_v63, %s3514_s17 }
 0x132   : > { %851 = vrot.lane.b32.xlu1 %v3713_v60, %s3515_s18 }
 0x135   : > { %849 = vrot.lane.b32.xlu0 %v3722_v62, %s3515_s18 }
 0x136   : > { %867 = vrot.lane.b32.xlu1 %v3715_v61, %s3515_s18 }
 0x139   : > { %865 = vrot.lane.b32.xlu0 %v3727_v63, %s3515_s18 }
 0x13a   : > { %916 = vrot.lane.b32.xlu1 %v3713_v60, %s3516_s19 }
 0x13d   : > { %914 = vrot.lane.b32.xlu0 %v3722_v62, %s3516_s19 }
 0x13e   : > { %932 = vrot.lane.b32.xlu1 %v3715_v61, %s3516_s19 }
 0x141   : > { %930 = vrot.lane.b32.xlu0 %v3727_v63, %s3516_s19 }
 0x142   : > { %981 = vrot.lane.b32.xlu1 %v3713_v60, %s3517_s20 }
 0x145   : > { %979 = vrot.lane.b32.xlu0 %v3722_v62, %s3517_s20 }
 0x146   : > { %997 = vrot.lane.b32.xlu1 %v3715_v61, %s3517_s20 }
 0x149   : > { %995 = vrot.lane.b32.xlu0 %v3727_v63, %s3517_s20 }
 0x14a   : > { %1046 = vrot.lane.b32.xlu1 %v3713_v60, %s3518_s22 }
 0x14d   : > { %1044 = vrot.lane.b32.xlu0 %v3722_v62, %s3518_s22 }
 0x14e   : > { %1062 = vrot.lane.b32.xlu1 %v3715_v61, %s3518_s22 }
 0x151   : > { %1060 = vrot.lane.b32.xlu0 %v3727_v63, %s3518_s22 }
 0x152   : > { %1111 = vrot.lane.b32.xlu1 %v3713_v60, %s3519_s23  ;;  %v4035_v60 = vpop.f32.mrb[20].mxu1 }
 0x153   : > { %1400 = vst.msk [vmem:[%s3855_s25 + $0x68] sm:$0xff] %vm682_vm1, %v4035_v60 }
 0x155   : > { %1109 = vrot.lane.b32.xlu0 %v3722_v62, %s3519_s23 }
 0x156   : > { %1127 = vrot.lane.b32.xlu1 %v3715_v61, %s3519_s23 }
 0x159   : > { %1125 = vrot.lane.b32.xlu0 %v3727_v63, %s3519_s23  ;;  %v4044_v63 = vpop.f32.mrb[21].mxu1 }
 0x15a   : > { %719 = vrot.lane.b32.xlu1 %v3722_v62, %s3513_s27  ;;  %1399 = vst.msk [vmem:[%s3855_s25 + $0x60] sm:$0xff] %vm682_vm1, %v4044_v63  ;;  %v4053_v8 = vpop.f32.mrb[22].mxu1 }
 0x15b   : > { %1402 = vst.msk [vmem:[%s3855_s25 + $0x78] sm:$0xff] %vm682_vm1, %v4053_v8  ;;  %v4062_v11 = vpop.f32.mrb[23].mxu1 }
 0x15c   : > { %1401 = vst.msk [vmem:[%s3855_s25 + $0x70] sm:$0xff] %vm682_vm1, %v4062_v11 }
 0x15d   : > { %723 = vrot.lane.b32.xlu0 %v3744_v2, %s3513_s27 }
 0x15e   : > { %725 = vrot.lane.b32.xlu1 %v3735_v0, %s3513_s27 }
 0x15f   : > { %v718_v33 = vpop.permute.xlu0 %717 }
 0x160   : > { %v734_v32 = vpop.permute.xlu1 %733  ;;  %2835 = vst.msk [vmem:[%s3701_s16 + $0x88] sm:$0xff] %vm682_vm1, %v718_v33 }
 0x161   : > { %2843 = vst.msk [vmem:[%s3701_s16 + $0xc8] sm:$0xff] %vm682_vm1, %v734_v32  ;;  %739 = vrot.lane.b32.xlu0 %v3749_v3, %s3513_s27 }
 0x162   : > { %741 = vrot.lane.b32.xlu1 %v3737_v1, %s3513_s27 }
 0x163   : > { %v716_v38 = vpop.permute.xlu0 %715 }
 0x164   : > { %v783_v37 = vpop.permute.xlu1 %782  ;;  %2834 = vst.msk [vmem:[%s3701_s16 + $0x80] sm:$0xff] %vm682_vm1, %v716_v38 }
 0x165   : > { %2851 = vst.msk [vmem:[%s3701_s16 + $0x108] sm:$0xff] %vm682_vm1, %v783_v37  ;;  %788 = vrot.lane.b32.xlu0 %v3744_v2, %s3514_s17 }
 0x166   : > { %790 = vrot.lane.b32.xlu1 %v3735_v0, %s3514_s17 }
 0x167   : > { %v732_v43 = vpop.permute.xlu0 %731 }
 0x168   : > { %v799_v42 = vpop.permute.xlu1 %798  ;;  %2842 = vst.msk [vmem:[%s3701_s16 + $0xc0] sm:$0xff] %vm682_vm1, %v732_v43 }
 0x169   : > { %2859 = vst.msk [vmem:[%s3701_s16 + $0x148] sm:$0xff] %vm682_vm1, %v799_v42  ;;  %804 = vrot.lane.b32.xlu0 %v3749_v3, %s3514_s17 }
 0x16a   : > { %806 = vrot.lane.b32.xlu1 %v3737_v1, %s3514_s17 }
 0x16b   : > { %v781_v48 = vpop.permute.xlu0 %780 }
 0x16c   : > { %v848_v47 = vpop.permute.xlu1 %847  ;;  %2850 = vst.msk [vmem:[%s3701_s16 + $0x100] sm:$0xff] %vm682_vm1, %v781_v48 }
 0x16d   : > { %2867 = vst.msk [vmem:[%s3701_s16 + $0x188] sm:$0xff] %vm682_vm1, %v848_v47  ;;  %853 = vrot.lane.b32.xlu0 %v3744_v2, %s3515_s18 }
 0x16e   : > { %855 = vrot.lane.b32.xlu1 %v3735_v0, %s3515_s18 }
 0x16f   : > { %v797_v53 = vpop.permute.xlu0 %796 }
 0x170   : > { %v864_v52 = vpop.permute.xlu1 %863  ;;  %2858 = vst.msk [vmem:[%s3701_s16 + $0x140] sm:$0xff] %vm682_vm1, %v797_v53 }
 0x171   : > { %2875 = vst.msk [vmem:[%s3701_s16 + $0x1c8] sm:$0xff] %vm682_vm1, %v864_v52  ;;  %869 = vrot.lane.b32.xlu0 %v3749_v3, %s3515_s18 }
 0x172   : > { %871 = vrot.lane.b32.xlu1 %v3737_v1, %s3515_s18 }
 0x173   : > { %v846_v58 = vpop.permute.xlu0 %845 }
 0x174   : > { %v913_v57 = vpop.permute.xlu1 %912  ;;  %2866 = vst.msk [vmem:[%s3701_s16 + $0x180] sm:$0xff] %vm682_vm1, %v846_v58 }
 0x175   : > { %2883 = vst.msk [vmem:[%s3701_s16 + $0x208] sm:$0xff] %vm682_vm1, %v913_v57  ;;  %918 = vrot.lane.b32.xlu0 %v3744_v2, %s3516_s19 }
 0x176   : > { %920 = vrot.lane.b32.xlu1 %v3735_v0, %s3516_s19 }
 0x177   : > { %v862_v62 = vpop.permute.xlu0 %861 }
 0x178   : > { %v929_v61 = vpop.permute.xlu1 %928  ;;  %2874 = vst.msk [vmem:[%s3701_s16 + $0x1c0] sm:$0xff] %vm682_vm1, %v862_v62 }
 0x179   : > { %2891 = vst.msk [vmem:[%s3701_s16 + $0x248] sm:$0xff] %vm682_vm1, %v929_v61  ;;  %934 = vrot.lane.b32.xlu0 %v3749_v3, %s3516_s19 }
 0x17a   : > { %936 = vrot.lane.b32.xlu1 %v3737_v1, %s3516_s19 }
 0x17b   : > { %v911_v10 = vpop.permute.xlu0 %910 }
 0x17c   : > { %v978_v9 = vpop.permute.xlu1 %977  ;;  %2882 = vst.msk [vmem:[%s3701_s16 + $0x200] sm:$0xff] %vm682_vm1, %v911_v10 }
 0x17d   : > { %2899 = vst.msk [vmem:[%s3701_s16 + $0x288] sm:$0xff] %vm682_vm1, %v978_v9  ;;  %983 = vrot.lane.b32.xlu0 %v3744_v2, %s3517_s20 }
 0x17e   : > { %985 = vrot.lane.b32.xlu1 %v3735_v0, %s3517_s20 }
 0x17f   : > { %v927_v13 = vpop.permute.xlu0 %926 }
 0x180   : > { %v994_v12 = vpop.permute.xlu1 %993  ;;  %2890 = vst.msk [vmem:[%s3701_s16 + $0x240] sm:$0xff] %vm682_vm1, %v927_v13 }
 0x181   : > { %2907 = vst.msk [vmem:[%s3701_s16 + $0x2c8] sm:$0xff] %vm682_vm1, %v994_v12  ;;  %999 = vrot.lane.b32.xlu0 %v3749_v3, %s3517_s20 }
 0x182   : > { %1001 = vrot.lane.b32.xlu1 %v3737_v1, %s3517_s20 }
 0x183   : > { %v976_v17 = vpop.permute.xlu0 %975 }
 0x184   : > { %v1043_v16 = vpop.permute.xlu1 %1042  ;;  %2898 = vst.msk [vmem:[%s3701_s16 + $0x280] sm:$0xff] %vm682_vm1, %v976_v17 }
 0x185   : > { %2915 = vst.msk [vmem:[%s3701_s16 + $0x308] sm:$0xff] %vm682_vm1, %v1043_v16  ;;  %1048 = vrot.lane.b32.xlu0 %v3744_v2, %s3518_s22 }
 0x186   : > { %1050 = vrot.lane.b32.xlu1 %v3735_v0, %s3518_s22 }
 0x187   : > { %v992_v19 = vpop.permute.xlu0 %991 }
 0x188   : > { %v1059_v18 = vpop.permute.xlu1 %1058  ;;  %2906 = vst.msk [vmem:[%s3701_s16 + $0x2c0] sm:$0xff] %vm682_vm1, %v992_v19 }
 0x189   : > { %2923 = vst.msk [vmem:[%s3701_s16 + $0x348] sm:$0xff] %vm682_vm1, %v1059_v18  ;;  %1064 = vrot.lane.b32.xlu0 %v3749_v3, %s3518_s22 }
 0x18a   : > { %1066 = vrot.lane.b32.xlu1 %v3737_v1, %s3518_s22 }
 0x18b   : > { %v1041_v21 = vpop.permute.xlu0 %1040 }
 0x18c   : > { %v1108_v20 = vpop.permute.xlu1 %1107  ;;  %2914 = vst.msk [vmem:[%s3701_s16 + $0x300] sm:$0xff] %vm682_vm1, %v1041_v21 }
 0x18d   : > { %2931 = vst.msk [vmem:[%s3701_s16 + $0x388] sm:$0xff] %vm682_vm1, %v1108_v20  ;;  %1113 = vrot.lane.b32.xlu0 %v3744_v2, %s3519_s23 }
 0x18e   : > { %1115 = vrot.lane.b32.xlu1 %v3735_v0, %s3519_s23 }
 0x18f   : > { %v1057_v25 = vpop.permute.xlu0 %1056 }
 0x190   : > { %v1124_v24 = vpop.permute.xlu1 %1123  ;;  %2922 = vst.msk [vmem:[%s3701_s16 + $0x340] sm:$0xff] %vm682_vm1, %v1057_v25 }
 0x191   : > { %2939 = vst.msk [vmem:[%s3701_s16 + $0x3c8] sm:$0xff] %vm682_vm1, %v1124_v24  ;;  %1129 = vrot.lane.b32.xlu0 %v3749_v3, %s3519_s23 }
 0x192   : > { %1131 = vrot.lane.b32.xlu1 %v3737_v1, %s3519_s23 }
 0x193   : > { %v1106_v0 = vpop.permute.xlu0 %1105 }
 0x194   : > { %v722_v26 = vpop.permute.xlu1 %721  ;;  %2930 = vst.msk [vmem:[%s3701_s16 + $0x380] sm:$0xff] %vm682_vm1, %v1106_v0 }
 0x195   : > { %2837 = vst.msk [vmem:[%s3701_s16 + $0x98] sm:$0xff] %vm682_vm1, %v722_v26  ;;  %727 = vrot.lane.b32.xlu0 %v3776_v5, %s3513_s27 }
 0x196   : > { %729 = vrot.lane.b32.xlu1 %v3771_v4, %s3513_s27 }
 0x197   : > { %v1122_v1 = vpop.permute.xlu0 %1121 }
 0x198   : > { %v738_v2 = vpop.permute.xlu1 %737  ;;  %2938 = vst.msk [vmem:[%s3701_s16 + $0x3c0] sm:$0xff] %vm682_vm1, %v1122_v1 }
 0x199   : > { %2845 = vst.msk [vmem:[%s3701_s16 + $0xd8] sm:$0xff] %vm682_vm1, %v738_v2  ;;  %743 = vrot.lane.b32.xlu0 %v3788_v7, %s3513_s27 }
 0x19a   : > { %745 = vrot.lane.b32.xlu1 %v3783_v6, %s3513_s27 }
 0x19b   : > { %v736_v3 = vpop.permute.xlu0 %735 }
 0x19c   : > { %v787_v27 = vpop.permute.xlu1 %786  ;;  %2844 = vst.msk [vmem:[%s3701_s16 + $0xd0] sm:$0xff] %vm682_vm1, %v736_v3 }
 0x19d   : > { %2853 = vst.msk [vmem:[%s3701_s16 + $0x118] sm:$0xff] %vm682_vm1, %v787_v27  ;;  %792 = vrot.lane.b32.xlu0 %v3776_v5, %s3514_s17 }
 0x19e   : > { %794 = vrot.lane.b32.xlu1 %v3771_v4, %s3514_s17 }
 0x19f   : > { %v785_v31 = vpop.permute.xlu0 %784 }
 0x1a0   : > { %v803_v30 = vpop.permute.xlu1 %802  ;;  %2852 = vst.msk [vmem:[%s3701_s16 + $0x110] sm:$0xff] %vm682_vm1, %v785_v31 }
 0x1a1   : > { %2861 = vst.msk [vmem:[%s3701_s16 + $0x158] sm:$0xff] %vm682_vm1, %v803_v30  ;;  %808 = vrot.lane.b32.xlu0 %v3788_v7, %s3514_s17 }
 0x1a2   : > { %810 = vrot.lane.b32.xlu1 %v3783_v6, %s3514_s17 }
 0x1a3   : > { %v801_v33 = vpop.permute.xlu0 %800 }
 0x1a4   : > { %v852_v32 = vpop.permute.xlu1 %851  ;;  %2860 = vst.msk [vmem:[%s3701_s16 + $0x150] sm:$0xff] %vm682_vm1, %v801_v33 }
 0x1a5   : > { %2869 = vst.msk [vmem:[%s3701_s16 + $0x198] sm:$0xff] %vm682_vm1, %v852_v32  ;;  %857 = vrot.lane.b32.xlu0 %v3776_v5, %s3515_s18 }
 0x1a6   : > { %859 = vrot.lane.b32.xlu1 %v3771_v4, %s3515_s18 }
 0x1a7   : > { %v850_v35 = vpop.permute.xlu0 %849 }
 0x1a8   : > { %v868_v34 = vpop.permute.xlu1 %867  ;;  %2868 = vst.msk [vmem:[%s3701_s16 + $0x190] sm:$0xff] %vm682_vm1, %v850_v35 }
 0x1a9   : > { %2877 = vst.msk [vmem:[%s3701_s16 + $0x1d8] sm:$0xff] %vm682_vm1, %v868_v34  ;;  %873 = vrot.lane.b32.xlu0 %v3788_v7, %s3515_s18 }
 0x1aa   : > { %875 = vrot.lane.b32.xlu1 %v3783_v6, %s3515_s18 }
 0x1ab   : > { %v866_v38 = vpop.permute.xlu0 %865 }
 0x1ac   : > { %v917_v37 = vpop.permute.xlu1 %916  ;;  %2876 = vst.msk [vmem:[%s3701_s16 + $0x1d0] sm:$0xff] %vm682_vm1, %v866_v38 }
 0x1ad   : > { %2885 = vst.msk [vmem:[%s3701_s16 + $0x218] sm:$0xff] %vm682_vm1, %v917_v37  ;;  %922 = vrot.lane.b32.xlu0 %v3776_v5, %s3516_s19 }
 0x1ae   : > { %924 = vrot.lane.b32.xlu1 %v3771_v4, %s3516_s19 }
 0x1af   : > { %v915_v41 = vpop.permute.xlu0 %914 }
 0x1b0   : > { %v933_v40 = vpop.permute.xlu1 %932  ;;  %2884 = vst.msk [vmem:[%s3701_s16 + $0x210] sm:$0xff] %vm682_vm1, %v915_v41 }
 0x1b1   : > { %2893 = vst.msk [vmem:[%s3701_s16 + $0x258] sm:$0xff] %vm682_vm1, %v933_v40  ;;  %938 = vrot.lane.b32.xlu0 %v3788_v7, %s3516_s19 }
 0x1b2   : > { %940 = vrot.lane.b32.xlu1 %v3783_v6, %s3516_s19 }
 0x1b3   : > { %v931_v43 = vpop.permute.xlu0 %930 }
 0x1b4   : > { %v982_v42 = vpop.permute.xlu1 %981  ;;  %2892 = vst.msk [vmem:[%s3701_s16 + $0x250] sm:$0xff] %vm682_vm1, %v931_v43 }
 0x1b5   : > { %2901 = vst.msk [vmem:[%s3701_s16 + $0x298] sm:$0xff] %vm682_vm1, %v982_v42  ;;  %987 = vrot.lane.b32.xlu0 %v3776_v5, %s3517_s20 }
 0x1b6   : > { %989 = vrot.lane.b32.xlu1 %v3771_v4, %s3517_s20 }
 0x1b7   : > { %v980_v45 = vpop.permute.xlu0 %979 }
 0x1b8   : > { %v998_v44 = vpop.permute.xlu1 %997  ;;  %2900 = vst.msk [vmem:[%s3701_s16 + $0x290] sm:$0xff] %vm682_vm1, %v980_v45 }
 0x1b9   : > { %2909 = vst.msk [vmem:[%s3701_s16 + $0x2d8] sm:$0xff] %vm682_vm1, %v998_v44  ;;  %1003 = vrot.lane.b32.xlu0 %v3788_v7, %s3517_s20 }
 0x1ba   : > { %1005 = vrot.lane.b32.xlu1 %v3783_v6, %s3517_s20 }
 0x1bb   : > { %v996_v48 = vpop.permute.xlu0 %995 }
 0x1bc   : > { %v1047_v47 = vpop.permute.xlu1 %1046  ;;  %2908 = vst.msk [vmem:[%s3701_s16 + $0x2d0] sm:$0xff] %vm682_vm1, %v996_v48 }
 0x1bd   : > { %2917 = vst.msk [vmem:[%s3701_s16 + $0x318] sm:$0xff] %vm682_vm1, %v1047_v47  ;;  %1052 = vrot.lane.b32.xlu0 %v3776_v5, %s3518_s22 }
 0x1be   : > { %1054 = vrot.lane.b32.xlu1 %v3771_v4, %s3518_s22 }
 0x1bf   : > { %v1045_v51 = vpop.permute.xlu0 %1044 }
 0x1c0   : > { %v1063_v50 = vpop.permute.xlu1 %1062  ;;  %2916 = vst.msk [vmem:[%s3701_s16 + $0x310] sm:$0xff] %vm682_vm1, %v1045_v51 }
 0x1c1   : > { %2925 = vst.msk [vmem:[%s3701_s16 + $0x358] sm:$0xff] %vm682_vm1, %v1063_v50  ;;  %1068 = vrot.lane.b32.xlu0 %v3788_v7, %s3518_s22 }
 0x1c2   : > { %1070 = vrot.lane.b32.xlu1 %v3783_v6, %s3518_s22 }
 0x1c3   : > { %v1061_v53 = vpop.permute.xlu0 %1060 }
 0x1c4   : > { %v1112_v52 = vpop.permute.xlu1 %1111  ;;  %2924 = vst.msk [vmem:[%s3701_s16 + $0x350] sm:$0xff] %vm682_vm1, %v1061_v53 }
 0x1c5   : > { %2933 = vst.msk [vmem:[%s3701_s16 + $0x398] sm:$0xff] %vm682_vm1, %v1112_v52  ;;  %1117 = vrot.lane.b32.xlu0 %v3776_v5, %s3519_s23 }
 0x1c6   : > { %1119 = vrot.lane.b32.xlu1 %v3771_v4, %s3519_s23 }
 0x1c7   : > { %v1110_v55 = vpop.permute.xlu0 %1109 }
 0x1c8   : > { %v1128_v54 = vpop.permute.xlu1 %1127  ;;  %2932 = vst.msk [vmem:[%s3701_s16 + $0x390] sm:$0xff] %vm682_vm1, %v1110_v55 }
 0x1c9   : > { %2941 = vst.msk [vmem:[%s3701_s16 + $0x3d8] sm:$0xff] %vm682_vm1, %v1128_v54  ;;  %1133 = vrot.lane.b32.xlu0 %v3788_v7, %s3519_s23 }
 0x1ca   : > { %1135 = vrot.lane.b32.xlu1 %v3783_v6, %s3519_s23 }
 0x1cb   : > { %v1126_v4 = vpop.permute.xlu0 %1125 }
 0x1cc   : > { %v720_v57 = vpop.permute.xlu1 %719  ;;  %2940 = vst.msk [vmem:[%s3701_s16 + $0x3d0] sm:$0xff] %vm682_vm1, %v1126_v4  ;;  %v4421_v4 = vpop.f32.mrb[8].mxu0 }
 0x1cd   : > { %2836 = vst.msk [vmem:[%s3701_s16 + $0x90] sm:$0xff] %vm682_vm1, %v720_v57  ;;  %1419 = vrot.lane.b32.xlu0 %v3862_v15, %s3513_s27  ;;  %2092 = vst.msk [vmem:[%s4419_s12 + $0x8] sm:$0xff] %vm682_vm1, %v4421_v4 }
 0x1ce   : > { %1421 = vrot.lane.b32.xlu1 %v3857_v14, %s3513_s27 }
 0x1cf   : > { %v724_v6 = vpop.permute.xlu0 %723 }
 0x1d0   : > { %v726_v5 = vpop.permute.xlu1 %725  ;;  %2838 = vst.msk [vmem:[%s3701_s16 + $0xa0] sm:$0xff] %vm682_vm1, %v724_v6  ;;  %v4430_v6 = vpop.f32.mrb[9].mxu0 }
 0x1d1   : > { %2839 = vst.msk [vmem:[%s3701_s16 + $0xa8] sm:$0xff] %vm682_vm1, %v726_v5  ;;  %1484 = vrot.lane.b32.xlu0 %v3862_v15, %s3514_s17  ;;  %2091 = vst.msk [vmem:[%s4419_s12] sm:$0xff] %vm682_vm1, %v4430_v6 }
 0x1d2   : > { %1486 = vrot.lane.b32.xlu1 %v3857_v14, %s3514_s17 }
 0x1d3   : > { %v740_v58 = vpop.permute.xlu0 %739 }
 0x1d4   : > { %v742_v7 = vpop.permute.xlu1 %741  ;;  %2846 = vst.msk [vmem:[%s3701_s16 + $0xe0] sm:$0xff] %vm682_vm1, %v740_v58 }
 0x1d5   : > { %2847 = vst.msk [vmem:[%s3701_s16 + $0xe8] sm:$0xff] %vm682_vm1, %v742_v7  ;;  %1423 = vrot.lane.b32.xlu0 %v3892_v23, %s3513_s27  ;;  %v4439_v7 = vpop.f32.mrb[10].mxu0 }
 0x1d6   : > { %1425 = vrot.lane.b32.xlu1 %v3887_v22, %s3513_s27  ;;  %2094 = vst.msk [vmem:[%s4419_s12 + $0x18] sm:$0xff] %vm682_vm1, %v4439_v7 }
 0x1d7   : > { %v789_v62 = vpop.permute.xlu0 %788 }
 0x1d8   : > { %v791_v61 = vpop.permute.xlu1 %790  ;;  %2854 = vst.msk [vmem:[%s3701_s16 + $0x120] sm:$0xff] %vm682_vm1, %v789_v62  ;;  %v4448_v62 = vpop.f32.mrb[11].mxu0 }
 0x1d9   : > { %2855 = vst.msk [vmem:[%s3701_s16 + $0x128] sm:$0xff] %vm682_vm1, %v791_v61  ;;  %1488 = vrot.lane.b32.xlu0 %v3892_v23, %s3514_s17  ;;  %2093 = vst.msk [vmem:[%s4419_s12 + $0x10] sm:$0xff] %vm682_vm1, %v4448_v62 }
 0x1da   : > { %1490 = vrot.lane.b32.xlu1 %v3887_v22, %s3514_s17 }
 0x1db   : > { %v805_v10 = vpop.permute.xlu0 %804 }
 0x1dc   : > { %v807_v9 = vpop.permute.xlu1 %806  ;;  %2862 = vst.msk [vmem:[%s3701_s16 + $0x160] sm:$0xff] %vm682_vm1, %v805_v10 }
 0x1dd   : > { %2863 = vst.msk [vmem:[%s3701_s16 + $0x168] sm:$0xff] %vm682_vm1, %v807_v9  ;;  %1427 = vrot.lane.b32.xlu0 %v3923_v29, %s3513_s27  ;;  %v4457_v9 = vpop.f32.mrb[12].mxu0 }
 0x1de   : > { %1429 = vrot.lane.b32.xlu1 %v3917_v28, %s3513_s27  ;;  %2096 = vst.msk [vmem:[%s4419_s12 + $0x28] sm:$0xff] %vm682_vm1, %v4457_v9 }
 0x1df   : > { %v854_v13 = vpop.permute.xlu0 %853 }
 0x1e0   : > { %v856_v12 = vpop.permute.xlu1 %855  ;;  %2870 = vst.msk [vmem:[%s3701_s16 + $0x1a0] sm:$0xff] %vm682_vm1, %v854_v13  ;;  %v4466_v13 = vpop.f32.mrb[13].mxu0 }
 0x1e1   : > { %2871 = vst.msk [vmem:[%s3701_s16 + $0x1a8] sm:$0xff] %vm682_vm1, %v856_v12  ;;  %1492 = vrot.lane.b32.xlu0 %v3923_v29, %s3514_s17  ;;  %2095 = vst.msk [vmem:[%s4419_s12 + $0x20] sm:$0xff] %vm682_vm1, %v4466_v13 }
 0x1e2   : > { %1494 = vrot.lane.b32.xlu1 %v3917_v28, %s3514_s17 }
 0x1e3   : > { %v870_v17 = vpop.permute.xlu0 %869 }
 0x1e4   : > { %v872_v16 = vpop.permute.xlu1 %871  ;;  %2878 = vst.msk [vmem:[%s3701_s16 + $0x1e0] sm:$0xff] %vm682_vm1, %v870_v17 }
 0x1e5   : > { %2879 = vst.msk [vmem:[%s3701_s16 + $0x1e8] sm:$0xff] %vm682_vm1, %v872_v16  ;;  %1431 = vrot.lane.b32.xlu0 %v3958_v39, %s3513_s27  ;;  %v4475_v16 = vpop.f32.mrb[14].mxu0 }
 0x1e6   : > { %1433 = vrot.lane.b32.xlu1 %v3947_v36, %s3513_s27  ;;  %2098 = vst.msk [vmem:[%s4419_s12 + $0x38] sm:$0xff] %vm682_vm1, %v4475_v16 }
 0x1e7   : > { %v919_v19 = vpop.permute.xlu0 %918 }
 0x1e8   : > { %v921_v18 = vpop.permute.xlu1 %920  ;;  %2886 = vst.msk [vmem:[%s3701_s16 + $0x220] sm:$0xff] %vm682_vm1, %v919_v19  ;;  %v4484_v19 = vpop.f32.mrb[15].mxu0 }
 0x1e9   : > { %2887 = vst.msk [vmem:[%s3701_s16 + $0x228] sm:$0xff] %vm682_vm1, %v921_v18  ;;  %1496 = vrot.lane.b32.xlu0 %v3958_v39, %s3514_s17  ;;  %2097 = vst.msk [vmem:[%s4419_s12 + $0x30] sm:$0xff] %vm682_vm1, %v4484_v19 }
 0x1ea   : > { %1498 = vrot.lane.b32.xlu1 %v3947_v36, %s3514_s17 }
 0x1eb   : > { %v935_v21 = vpop.permute.xlu0 %934 }
 0x1ec   : > { %v937_v20 = vpop.permute.xlu1 %936  ;;  %2894 = vst.msk [vmem:[%s3701_s16 + $0x260] sm:$0xff] %vm682_vm1, %v935_v21 }
 0x1ed   : > { %2895 = vst.msk [vmem:[%s3701_s16 + $0x268] sm:$0xff] %vm682_vm1, %v937_v20  ;;  %1435 = vrot.lane.b32.xlu0 %v3992_v49, %s3513_s27  ;;  %v4493_v20 = vpop.f32.mrb[16].mxu0 }
 0x1ee   : > { %1437 = vrot.lane.b32.xlu1 %v3981_v46, %s3513_s27  ;;  %2100 = vst.msk [vmem:[%s4419_s12 + $0x48] sm:$0xff] %vm682_vm1, %v4493_v20 }
 0x1ef   : > { %v984_v25 = vpop.permute.xlu0 %983 }
 0x1f0   : > { %v986_v24 = vpop.permute.xlu1 %985  ;;  %2902 = vst.msk [vmem:[%s3701_s16 + $0x2a0] sm:$0xff] %vm682_vm1, %v984_v25  ;;  %v4502_v25 = vpop.f32.mrb[17].mxu0 }
 0x1f1   : > { %2903 = vst.msk [vmem:[%s3701_s16 + $0x2a8] sm:$0xff] %vm682_vm1, %v986_v24  ;;  %1500 = vrot.lane.b32.xlu0 %v3992_v49, %s3514_s17  ;;  %2099 = vst.msk [vmem:[%s4419_s12 + $0x40] sm:$0xff] %vm682_vm1, %v4502_v25 }
 0x1f2   : > { %1502 = vrot.lane.b32.xlu1 %v3981_v46, %s3514_s17 }
 0x1f3   : > { %v1000_v26 = vpop.permute.xlu0 %999 }
 0x1f4   : > { %v1002_v0 = vpop.permute.xlu1 %1001  ;;  %2910 = vst.msk [vmem:[%s3701_s16 + $0x2e0] sm:$0xff] %vm682_vm1, %v1000_v26 }
 0x1f5   : > { %2911 = vst.msk [vmem:[%s3701_s16 + $0x2e8] sm:$0xff] %vm682_vm1, %v1002_v0  ;;  %1439 = vrot.lane.b32.xlu0 %v4026_v59, %s3513_s27  ;;  %v4511_v0 = vpop.f32.mrb[18].mxu0 }
 0x1f6   : > { %1441 = vrot.lane.b32.xlu1 %v4015_v56, %s3513_s27  ;;  %2102 = vst.msk [vmem:[%s4419_s12 + $0x58] sm:$0xff] %vm682_vm1, %v4511_v0 }
 0x1f7   : > { %v1049_v2 = vpop.permute.xlu0 %1048 }
 0x1f8   : > { %v1051_v1 = vpop.permute.xlu1 %1050  ;;  %2918 = vst.msk [vmem:[%s3701_s16 + $0x320] sm:$0xff] %vm682_vm1, %v1049_v2  ;;  %v4520_v2 = vpop.f32.mrb[19].mxu0 }
 0x1f9   : > { %2919 = vst.msk [vmem:[%s3701_s16 + $0x328] sm:$0xff] %vm682_vm1, %v1051_v1  ;;  %1504 = vrot.lane.b32.xlu0 %v4026_v59, %s3514_s17  ;;  %2101 = vst.msk [vmem:[%s4419_s12 + $0x50] sm:$0xff] %vm682_vm1, %v4520_v2 }
 0x1fa   : > { %1445 = vrot.lane.b32.xlu1 %v4035_v60, %s3513_s27 }
 0x1fb   : > { %v1065_v27 = vpop.permute.xlu0 %1064 }
 0x1fc   : > { %v1067_v3 = vpop.permute.xlu1 %1066  ;;  %2926 = vst.msk [vmem:[%s3701_s16 + $0x360] sm:$0xff] %vm682_vm1, %v1065_v27 }
 0x1fd   : > { %2927 = vst.msk [vmem:[%s3701_s16 + $0x368] sm:$0xff] %vm682_vm1, %v1067_v3  ;;  %1443 = vrot.lane.b32.xlu0 %v4044_v63, %s3513_s27  ;;  %v4529_v3 = vpop.f32.mrb[20].mxu0 }
 0x1fe   : > { %1449 = vrot.lane.b32.xlu1 %v4053_v8, %s3513_s27  ;;  %2104 = vst.msk [vmem:[%s4419_s12 + $0x68] sm:$0xff] %vm682_vm1, %v4529_v3 }
 0x1ff   : > { %v1114_v31 = vpop.permute.xlu0 %1113 }
 0x200   : > { %v1116_v30 = vpop.permute.xlu1 %1115  ;;  %2934 = vst.msk [vmem:[%s3701_s16 + $0x3a0] sm:$0xff] %vm682_vm1, %v1114_v31  ;;  %v4538_v31 = vpop.f32.mrb[21].mxu0 }
 0x201   : > { %2935 = vst.msk [vmem:[%s3701_s16 + $0x3a8] sm:$0xff] %vm682_vm1, %v1116_v30  ;;  %1447 = vrot.lane.b32.xlu0 %v4062_v11, %s3513_s27  ;;  %2103 = vst.msk [vmem:[%s4419_s12 + $0x60] sm:$0xff] %vm682_vm1, %v4538_v31 }
 0x202   : > { %1506 = vrot.lane.b32.xlu1 %v4015_v56, %s3514_s17 }
 0x203   : > { %v1130_v33 = vpop.permute.xlu0 %1129 }
 0x204   : > { %v1132_v32 = vpop.permute.xlu1 %1131  ;;  %2942 = vst.msk [vmem:[%s3701_s16 + $0x3e0] sm:$0xff] %vm682_vm1, %v1130_v33 }
 0x205   : > { %2943 = vst.msk [vmem:[%s3701_s16 + $0x3e8] sm:$0xff] %vm682_vm1, %v1132_v32  ;;  %1508 = vrot.lane.b32.xlu0 %v4044_v63, %s3514_s17  ;;  %v4547_v32 = vpop.f32.mrb[22].mxu0 }
 0x206   : > { %1510 = vrot.lane.b32.xlu1 %v4035_v60, %s3514_s17  ;;  %2106 = vst.msk [vmem:[%s4419_s12 + $0x78] sm:$0xff] %vm682_vm1, %v4547_v32 }
 0x207   : > { %v728_v35 = vpop.permute.xlu0 %727 }
 0x208   : > { %v730_v34 = vpop.permute.xlu1 %729  ;;  %2840 = vst.msk [vmem:[%s3701_s16 + $0xb0] sm:$0xff] %vm682_vm1, %v728_v35  ;;  %v4556_v35 = vpop.f32.mrb[23].mxu0 }
 0x209   : > { %2841 = vst.msk [vmem:[%s3701_s16 + $0xb8] sm:$0xff] %vm682_vm1, %v730_v34  ;;  %1512 = vrot.lane.b32.xlu0 %v4062_v11, %s3514_s17  ;;  %2105 = vst.msk [vmem:[%s4419_s12 + $0x70] sm:$0xff] %vm682_vm1, %v4556_v35 }
 0x20a   : > { %1514 = vrot.lane.b32.xlu1 %v4053_v8, %s3514_s17 }
 0x20b   : > { %v744_v38 = vpop.permute.xlu0 %743 }
 0x20c   : > { %v746_v37 = vpop.permute.xlu1 %745  ;;  %2848 = vst.msk [vmem:[%s3701_s16 + $0xf0] sm:$0xff] %vm682_vm1, %v744_v38 }
 0x20d   : > { %2849 = vst.msk [vmem:[%s3701_s16 + $0xf8] sm:$0xff] %vm682_vm1, %v746_v37  ;;  %1549 = vrot.lane.b32.xlu0 %v3862_v15, %s3515_s18 }
 0x20e   : > { %1551 = vrot.lane.b32.xlu1 %v3857_v14, %s3515_s18 }
 0x20f   : > { %v793_v41 = vpop.permute.xlu0 %792 }
 0x210   : > { %v795_v40 = vpop.permute.xlu1 %794  ;;  %2856 = vst.msk [vmem:[%s3701_s16 + $0x130] sm:$0xff] %vm682_vm1, %v793_v41 }
 0x211   : > { %2857 = vst.msk [vmem:[%s3701_s16 + $0x138] sm:$0xff] %vm682_vm1, %v795_v40  ;;  %1553 = vrot.lane.b32.xlu0 %v3892_v23, %s3515_s18 }
 0x212   : > { %1555 = vrot.lane.b32.xlu1 %v3887_v22, %s3515_s18 }
 0x213   : > { %v809_v43 = vpop.permute.xlu0 %808 }
 0x214   : > { %v811_v42 = vpop.permute.xlu1 %810  ;;  %2864 = vst.msk [vmem:[%s3701_s16 + $0x170] sm:$0xff] %vm682_vm1, %v809_v43 }
 0x215   : > { %2865 = vst.msk [vmem:[%s3701_s16 + $0x178] sm:$0xff] %vm682_vm1, %v811_v42  ;;  %1557 = vrot.lane.b32.xlu0 %v3923_v29, %s3515_s18 }
 0x216   : > { %1559 = vrot.lane.b32.xlu1 %v3917_v28, %s3515_s18 }
 0x217   : > { %v858_v45 = vpop.permute.xlu0 %857 }
 0x218   : > { %v860_v44 = vpop.permute.xlu1 %859  ;;  %2872 = vst.msk [vmem:[%s3701_s16 + $0x1b0] sm:$0xff] %vm682_vm1, %v858_v45 }
 0x219   : > { %2873 = vst.msk [vmem:[%s3701_s16 + $0x1b8] sm:$0xff] %vm682_vm1, %v860_v44  ;;  %1561 = vrot.lane.b32.xlu0 %v3958_v39, %s3515_s18 }
 0x21a   : > { %1563 = vrot.lane.b32.xlu1 %v3947_v36, %s3515_s18 }
 0x21b   : > { %v874_v48 = vpop.permute.xlu0 %873 }
 0x21c   : > { %v876_v47 = vpop.permute.xlu1 %875  ;;  %2880 = vst.msk [vmem:[%s3701_s16 + $0x1f0] sm:$0xff] %vm682_vm1, %v874_v48 }
 0x21d   : > { %2881 = vst.msk [vmem:[%s3701_s16 + $0x1f8] sm:$0xff] %vm682_vm1, %v876_v47  ;;  %1565 = vrot.lane.b32.xlu0 %v3992_v49, %s3515_s18 }
 0x21e   : > { %1567 = vrot.lane.b32.xlu1 %v3981_v46, %s3515_s18 }
 0x21f   : > { %v923_v51 = vpop.permute.xlu0 %922 }
 0x220   : > { %v925_v50 = vpop.permute.xlu1 %924  ;;  %2888 = vst.msk [vmem:[%s3701_s16 + $0x230] sm:$0xff] %vm682_vm1, %v923_v51 }
 0x221   : > { %2889 = vst.msk [vmem:[%s3701_s16 + $0x238] sm:$0xff] %vm682_vm1, %v925_v50  ;;  %1569 = vrot.lane.b32.xlu0 %v4026_v59, %s3515_s18 }
 0x222   : > { %1571 = vrot.lane.b32.xlu1 %v4015_v56, %s3515_s18 }
 0x223   : > { %v939_v53 = vpop.permute.xlu0 %938 }
 0x224   : > { %v941_v52 = vpop.permute.xlu1 %940  ;;  %2896 = vst.msk [vmem:[%s3701_s16 + $0x270] sm:$0xff] %vm682_vm1, %v939_v53 }
 0x225   : > { %2897 = vst.msk [vmem:[%s3701_s16 + $0x278] sm:$0xff] %vm682_vm1, %v941_v52  ;;  %1573 = vrot.lane.b32.xlu0 %v4044_v63, %s3515_s18 }
 0x226   : > { %1575 = vrot.lane.b32.xlu1 %v4035_v60, %s3515_s18 }
 0x227   : > { %v988_v55 = vpop.permute.xlu0 %987 }
 0x228   : > { %v990_v54 = vpop.permute.xlu1 %989  ;;  %2904 = vst.msk [vmem:[%s3701_s16 + $0x2b0] sm:$0xff] %vm682_vm1, %v988_v55 }
 0x229   : > { %2905 = vst.msk [vmem:[%s3701_s16 + $0x2b8] sm:$0xff] %vm682_vm1, %v990_v54  ;;  %1577 = vrot.lane.b32.xlu0 %v4062_v11, %s3515_s18 }
 0x22a   : > { %1579 = vrot.lane.b32.xlu1 %v4053_v8, %s3515_s18 }
 0x22b   : > { %v1004_v5 = vpop.permute.xlu0 %1003 }
 0x22c   : > { %v1006_v57 = vpop.permute.xlu1 %1005  ;;  %2912 = vst.msk [vmem:[%s3701_s16 + $0x2f0] sm:$0xff] %vm682_vm1, %v1004_v5 }
 0x22d   : > { %2913 = vst.msk [vmem:[%s3701_s16 + $0x2f8] sm:$0xff] %vm682_vm1, %v1006_v57  ;;  %1614 = vrot.lane.b32.xlu0 %v3862_v15, %s3516_s19 }
 0x22e   : > { %1616 = vrot.lane.b32.xlu1 %v3857_v14, %s3516_s19 }
 0x22f   : > { %v1053_v61 = vpop.permute.xlu0 %1052 }
 0x230   : > { %v1055_v58 = vpop.permute.xlu1 %1054  ;;  %2920 = vst.msk [vmem:[%s3701_s16 + $0x330] sm:$0xff] %vm682_vm1, %v1053_v61 }
 0x231   : > { %2921 = vst.msk [vmem:[%s3701_s16 + $0x338] sm:$0xff] %vm682_vm1, %v1055_v58  ;;  %1618 = vrot.lane.b32.xlu0 %v3892_v23, %s3516_s19 }
 0x232   : > { %1620 = vrot.lane.b32.xlu1 %v3887_v22, %s3516_s19 }
 0x233   : > { %v1069_v12 = vpop.permute.xlu0 %1068 }
 0x234   : > { %v1071_v10 = vpop.permute.xlu1 %1070  ;;  %2928 = vst.msk [vmem:[%s3701_s16 + $0x370] sm:$0xff] %vm682_vm1, %v1069_v12 }
 0x235   : > { %2929 = vst.msk [vmem:[%s3701_s16 + $0x378] sm:$0xff] %vm682_vm1, %v1071_v10  ;;  %1622 = vrot.lane.b32.xlu0 %v3923_v29, %s3516_s19 }
 0x236   : > { %1624 = vrot.lane.b32.xlu1 %v3917_v28, %s3516_s19 }
 0x237   : > { %v1118_v18 = vpop.permute.xlu0 %1117 }
 0x238   : > { %v1120_v17 = vpop.permute.xlu1 %1119  ;;  %2936 = vst.msk [vmem:[%s3701_s16 + $0x3b0] sm:$0xff] %vm682_vm1, %v1118_v18 }
 0x239   : > { %2937 = vst.msk [vmem:[%s3701_s16 + $0x3b8] sm:$0xff] %vm682_vm1, %v1120_v17  ;;  %1626 = vrot.lane.b32.xlu0 %v3958_v39, %s3516_s19 }
 0x23a   : > { %1628 = vrot.lane.b32.xlu1 %v3947_v36, %s3516_s19 }
 0x23b   : > { %v1134_v24 = vpop.permute.xlu0 %1133 }
 0x23c   : > { %v1136_v21 = vpop.permute.xlu1 %1135  ;;  %2944 = vst.msk [vmem:[%s3701_s16 + $0x3f0] sm:$0xff] %vm682_vm1, %v1134_v24 }
 0x23d   : > { %2945 = vst.msk [vmem:[%s3701_s16 + $0x3f8] sm:$0xff] %vm682_vm1, %v1136_v21  ;;  %1630 = vrot.lane.b32.xlu0 %v3992_v49, %s3516_s19 }
 0x23e   : > { %1632 = vrot.lane.b32.xlu1 %v3981_v46, %s3516_s19 }
 0x23f   : > { %v1420_v1 = vpop.permute.xlu0 %1419 }
 0x240   : > { %v1422_v26 = vpop.permute.xlu1 %1421  ;;  %2962 = vst.msk [vmem:[%s3855_s25 + $0x80] sm:$0xff] %vm682_vm1, %v1420_v1 }
 0x241   : > { %2963 = vst.msk [vmem:[%s3855_s25 + $0x88] sm:$0xff] %vm682_vm1, %v1422_v26  ;;  %1634 = vrot.lane.b32.xlu0 %v4026_v59, %s3516_s19 }
 0x242   : > { %1636 = vrot.lane.b32.xlu1 %v4015_v56, %s3516_s19 }
 0x243   : > { %v1485_v30 = vpop.permute.xlu0 %1484 }
 0x244   : > { %v1487_v27 = vpop.permute.xlu1 %1486  ;;  %2978 = vst.msk [vmem:[%s3855_s25 + $0x100] sm:$0xff] %vm682_vm1, %v1485_v30 }
 0x245   : > { %2979 = vst.msk [vmem:[%s3855_s25 + $0x108] sm:$0xff] %vm682_vm1, %v1487_v27  ;;  %1638 = vrot.lane.b32.xlu0 %v4044_v63, %s3516_s19 }
 0x246   : > { %1640 = vrot.lane.b32.xlu1 %v4035_v60, %s3516_s19 }
 0x247   : > { %v1424_v34 = vpop.permute.xlu0 %1423 }
 0x248   : > { %v1426_v33 = vpop.permute.xlu1 %1425  ;;  %2964 = vst.msk [vmem:[%s3855_s25 + $0x90] sm:$0xff] %vm682_vm1, %v1424_v34 }
 0x249   : > { %2965 = vst.msk [vmem:[%s3855_s25 + $0x98] sm:$0xff] %vm682_vm1, %v1426_v33  ;;  %1642 = vrot.lane.b32.xlu0 %v4062_v11, %s3516_s19 }
 0x24a   : > { %1644 = vrot.lane.b32.xlu1 %v4053_v8, %s3516_s19 }
 0x24b   : > { %v1489_v38 = vpop.permute.xlu0 %1488 }
 0x24c   : > { %v1491_v37 = vpop.permute.xlu1 %1490  ;;  %2980 = vst.msk [vmem:[%s3855_s25 + $0x110] sm:$0xff] %vm682_vm1, %v1489_v38 }
 0x24d   : > { %2981 = vst.msk [vmem:[%s3855_s25 + $0x118] sm:$0xff] %vm682_vm1, %v1491_v37  ;;  %1679 = vrot.lane.b32.xlu0 %v3862_v15, %s3517_s20 }
 0x24e   : > { %1681 = vrot.lane.b32.xlu1 %v3857_v14, %s3517_s20 }
 0x24f   : > { %v1428_v41 = vpop.permute.xlu0 %1427 }
 0x250   : > { %v1430_v40 = vpop.permute.xlu1 %1429  ;;  %2966 = vst.msk [vmem:[%s3855_s25 + $0xa0] sm:$0xff] %vm682_vm1, %v1428_v41 }
 0x251   : > { %2967 = vst.msk [vmem:[%s3855_s25 + $0xa8] sm:$0xff] %vm682_vm1, %v1430_v40  ;;  %1683 = vrot.lane.b32.xlu0 %v3892_v23, %s3517_s20 }
 0x252   : > { %1685 = vrot.lane.b32.xlu1 %v3887_v22, %s3517_s20 }
 0x253   : > { %v1493_v43 = vpop.permute.xlu0 %1492 }
 0x254   : > { %v1495_v42 = vpop.permute.xlu1 %1494  ;;  %2982 = vst.msk [vmem:[%s3855_s25 + $0x120] sm:$0xff] %vm682_vm1, %v1493_v43 }
 0x255   : > { %2983 = vst.msk [vmem:[%s3855_s25 + $0x128] sm:$0xff] %vm682_vm1, %v1495_v42  ;;  %1687 = vrot.lane.b32.xlu0 %v3923_v29, %s3517_s20 }
 0x256   : > { %1689 = vrot.lane.b32.xlu1 %v3917_v28, %s3517_s20 }
 0x257   : > { %v1432_v45 = vpop.permute.xlu0 %1431 }
 0x258   : > { %v1434_v44 = vpop.permute.xlu1 %1433  ;;  %2968 = vst.msk [vmem:[%s3855_s25 + $0xb0] sm:$0xff] %vm682_vm1, %v1432_v45 }
 0x259   : > { %2969 = vst.msk [vmem:[%s3855_s25 + $0xb8] sm:$0xff] %vm682_vm1, %v1434_v44  ;;  %1691 = vrot.lane.b32.xlu0 %v3958_v39, %s3517_s20 }
 0x25a   : > { %1693 = vrot.lane.b32.xlu1 %v3947_v36, %s3517_s20 }
 0x25b   : > { %v1497_v48 = vpop.permute.xlu0 %1496 }
 0x25c   : > { %v1499_v47 = vpop.permute.xlu1 %1498  ;;  %2984 = vst.msk [vmem:[%s3855_s25 + $0x130] sm:$0xff] %vm682_vm1, %v1497_v48 }
 0x25d   : > { %2985 = vst.msk [vmem:[%s3855_s25 + $0x138] sm:$0xff] %vm682_vm1, %v1499_v47  ;;  %1695 = vrot.lane.b32.xlu0 %v3992_v49, %s3517_s20 }
 0x25e   : > { %1697 = vrot.lane.b32.xlu1 %v3981_v46, %s3517_s20 }
 0x25f   : > { %v1436_v51 = vpop.permute.xlu0 %1435 }
 0x260   : > { %v1438_v50 = vpop.permute.xlu1 %1437  ;;  %2970 = vst.msk [vmem:[%s3855_s25 + $0xc0] sm:$0xff] %vm682_vm1, %v1436_v51 }
 0x261   : > { %2971 = vst.msk [vmem:[%s3855_s25 + $0xc8] sm:$0xff] %vm682_vm1, %v1438_v50  ;;  %1699 = vrot.lane.b32.xlu0 %v4026_v59, %s3517_s20 }
 0x262   : > { %1701 = vrot.lane.b32.xlu1 %v4015_v56, %s3517_s20 }
 0x263   : > { %v1501_v53 = vpop.permute.xlu0 %1500 }
 0x264   : > { %v1503_v52 = vpop.permute.xlu1 %1502  ;;  %2986 = vst.msk [vmem:[%s3855_s25 + $0x140] sm:$0xff] %vm682_vm1, %v1501_v53 }
 0x265   : > { %2987 = vst.msk [vmem:[%s3855_s25 + $0x148] sm:$0xff] %vm682_vm1, %v1503_v52  ;;  %1703 = vrot.lane.b32.xlu0 %v4044_v63, %s3517_s20 }
 0x266   : > { %1705 = vrot.lane.b32.xlu1 %v4035_v60, %s3517_s20 }
 0x267   : > { %v1440_v55 = vpop.permute.xlu0 %1439 }
 0x268   : > { %v1442_v54 = vpop.permute.xlu1 %1441  ;;  %2972 = vst.msk [vmem:[%s3855_s25 + $0xd0] sm:$0xff] %vm682_vm1, %v1440_v55 }
 0x269   : > { %2973 = vst.msk [vmem:[%s3855_s25 + $0xd8] sm:$0xff] %vm682_vm1, %v1442_v54  ;;  %1707 = vrot.lane.b32.xlu0 %v4062_v11, %s3517_s20 }
 0x26a   : > { %1709 = vrot.lane.b32.xlu1 %v4053_v8, %s3517_s20 }
 0x26b   : > { %v1505_v5 = vpop.permute.xlu0 %1504 }
 0x26c   : > { %v1446_v57 = vpop.permute.xlu1 %1445  ;;  %2988 = vst.msk [vmem:[%s3855_s25 + $0x150] sm:$0xff] %vm682_vm1, %v1505_v5 }
 0x26d   : > { %2975 = vst.msk [vmem:[%s3855_s25 + $0xe8] sm:$0xff] %vm682_vm1, %v1446_v57  ;;  %1744 = vrot.lane.b32.xlu0 %v3862_v15, %s3518_s22 }
 0x26e   : > { %1746 = vrot.lane.b32.xlu1 %v3857_v14, %s3518_s22 }
 0x26f   : > { %v1444_v61 = vpop.permute.xlu0 %1443 }
 0x270   : > { %v1450_v58 = vpop.permute.xlu1 %1449  ;;  %2974 = vst.msk [vmem:[%s3855_s25 + $0xe0] sm:$0xff] %vm682_vm1, %v1444_v61 }
 0x271   : > { %2977 = vst.msk [vmem:[%s3855_s25 + $0xf8] sm:$0xff] %vm682_vm1, %v1450_v58  ;;  %1748 = vrot.lane.b32.xlu0 %v3892_v23, %s3518_s22 }
 0x272   : > { %1750 = vrot.lane.b32.xlu1 %v3887_v22, %s3518_s22 }
 0x273   : > { %v1448_v12 = vpop.permute.xlu0 %1447 }
 0x274   : > { %v1507_v10 = vpop.permute.xlu1 %1506  ;;  %2976 = vst.msk [vmem:[%s3855_s25 + $0xf0] sm:$0xff] %vm682_vm1, %v1448_v12 }
 0x275   : > { %2989 = vst.msk [vmem:[%s3855_s25 + $0x158] sm:$0xff] %vm682_vm1, %v1507_v10  ;;  %1752 = vrot.lane.b32.xlu0 %v3923_v29, %s3518_s22 }
 0x276   : > { %1754 = vrot.lane.b32.xlu1 %v3917_v28, %s3518_s22 }
 0x277   : > { %v1509_v18 = vpop.permute.xlu0 %1508 }
 0x278   : > { %v1511_v17 = vpop.permute.xlu1 %1510  ;;  %2990 = vst.msk [vmem:[%s3855_s25 + $0x160] sm:$0xff] %vm682_vm1, %v1509_v18 }
 0x279   : > { %2991 = vst.msk [vmem:[%s3855_s25 + $0x168] sm:$0xff] %vm682_vm1, %v1511_v17  ;;  %1756 = vrot.lane.b32.xlu0 %v3958_v39, %s3518_s22 }
 0x27a   : > { %1758 = vrot.lane.b32.xlu1 %v3947_v36, %s3518_s22 }
 0x27b   : > { %v1513_v24 = vpop.permute.xlu0 %1512 }
 0x27c   : > { %v1515_v21 = vpop.permute.xlu1 %1514  ;;  %2992 = vst.msk [vmem:[%s3855_s25 + $0x170] sm:$0xff] %vm682_vm1, %v1513_v24 }
 0x27d   : > { %2993 = vst.msk [vmem:[%s3855_s25 + $0x178] sm:$0xff] %vm682_vm1, %v1515_v21  ;;  %1760 = vrot.lane.b32.xlu0 %v3992_v49, %s3518_s22 }
 0x27e   : > { %1762 = vrot.lane.b32.xlu1 %v3981_v46, %s3518_s22 }
 0x27f   : > { %v1550_v1 = vpop.permute.xlu0 %1549 }
 0x280   : > { %v1552_v26 = vpop.permute.xlu1 %1551  ;;  %2994 = vst.msk [vmem:[%s3855_s25 + $0x180] sm:$0xff] %vm682_vm1, %v1550_v1 }
 0x281   : > { %2995 = vst.msk [vmem:[%s3855_s25 + $0x188] sm:$0xff] %vm682_vm1, %v1552_v26  ;;  %1764 = vrot.lane.b32.xlu0 %v4026_v59, %s3518_s22 }
 0x282   : > { %1766 = vrot.lane.b32.xlu1 %v4015_v56, %s3518_s22 }
 0x283   : > { %v1554_v30 = vpop.permute.xlu0 %1553 }
 0x284   : > { %v1556_v27 = vpop.permute.xlu1 %1555  ;;  %2996 = vst.msk [vmem:[%s3855_s25 + $0x190] sm:$0xff] %vm682_vm1, %v1554_v30 }
 0x285   : > { %2997 = vst.msk [vmem:[%s3855_s25 + $0x198] sm:$0xff] %vm682_vm1, %v1556_v27  ;;  %1768 = vrot.lane.b32.xlu0 %v4044_v63, %s3518_s22 }
 0x286   : > { %1770 = vrot.lane.b32.xlu1 %v4035_v60, %s3518_s22 }
 0x287   : > { %v1558_v34 = vpop.permute.xlu0 %1557 }
 0x288   : > { %v1560_v33 = vpop.permute.xlu1 %1559  ;;  %2998 = vst.msk [vmem:[%s3855_s25 + $0x1a0] sm:$0xff] %vm682_vm1, %v1558_v34 }
 0x289   : > { %2999 = vst.msk [vmem:[%s3855_s25 + $0x1a8] sm:$0xff] %vm682_vm1, %v1560_v33  ;;  %1772 = vrot.lane.b32.xlu0 %v4062_v11, %s3518_s22 }
 0x28a   : > { %1774 = vrot.lane.b32.xlu1 %v4053_v8, %s3518_s22 }
 0x28b   : > { %v1562_v38 = vpop.permute.xlu0 %1561 }
 0x28c   : > { %v1564_v37 = vpop.permute.xlu1 %1563  ;;  %3000 = vst.msk [vmem:[%s3855_s25 + $0x1b0] sm:$0xff] %vm682_vm1, %v1562_v38 }
 0x28d   : > { %3001 = vst.msk [vmem:[%s3855_s25 + $0x1b8] sm:$0xff] %vm682_vm1, %v1564_v37  ;;  %1809 = vrot.lane.b32.xlu0 %v3862_v15, %s3519_s23 }
 0x28e   : > { %1811 = vrot.lane.b32.xlu1 %v3857_v14, %s3519_s23 }
 0x28f   : > { %v1566_v41 = vpop.permute.xlu0 %1565 }
 0x290   : > { %v1568_v40 = vpop.permute.xlu1 %1567  ;;  %3002 = vst.msk [vmem:[%s3855_s25 + $0x1c0] sm:$0xff] %vm682_vm1, %v1566_v41 }
 0x291   : > { %3003 = vst.msk [vmem:[%s3855_s25 + $0x1c8] sm:$0xff] %vm682_vm1, %v1568_v40  ;;  %1813 = vrot.lane.b32.xlu0 %v3892_v23, %s3519_s23 }
 0x292   : > { %1815 = vrot.lane.b32.xlu1 %v3887_v22, %s3519_s23 }
 0x293   : > { %v1570_v42 = vpop.permute.xlu0 %1569 }
 0x294   : > { %v1572_v14 = vpop.permute.xlu1 %1571  ;;  %3004 = vst.msk [vmem:[%s3855_s25 + $0x1d0] sm:$0xff] %vm682_vm1, %v1570_v42 }
 0x295   : > { %3005 = vst.msk [vmem:[%s3855_s25 + $0x1d8] sm:$0xff] %vm682_vm1, %v1572_v14  ;;  %1817 = vrot.lane.b32.xlu0 %v3923_v29, %s3519_s23 }
 0x296   : > { %1819 = vrot.lane.b32.xlu1 %v3917_v28, %s3519_s23 }
 0x297   : > { %v1574_v22 = vpop.permute.xlu0 %1573 }
 0x298   : > { %v1576_v15 = vpop.permute.xlu1 %1575  ;;  %3006 = vst.msk [vmem:[%s3855_s25 + $0x1e0] sm:$0xff] %vm682_vm1, %v1574_v22 }
 0x299   : > { %3007 = vst.msk [vmem:[%s3855_s25 + $0x1e8] sm:$0xff] %vm682_vm1, %v1576_v15  ;;  %1821 = vrot.lane.b32.xlu0 %v3958_v39, %s3519_s23 }
 0x29a   : > { %1823 = vrot.lane.b32.xlu1 %v3947_v36, %s3519_s23 }
 0x29b   : > { %v1578_v28 = vpop.permute.xlu0 %1577 }
 0x29c   : > { %v1580_v23 = vpop.permute.xlu1 %1579  ;;  %3008 = vst.msk [vmem:[%s3855_s25 + $0x1f0] sm:$0xff] %vm682_vm1, %v1578_v28 }
 0x29d   : > { %3009 = vst.msk [vmem:[%s3855_s25 + $0x1f8] sm:$0xff] %vm682_vm1, %v1580_v23  ;;  %1825 = vrot.lane.b32.xlu0 %v3992_v49, %s3519_s23 }
 0x29e   : > { %1827 = vrot.lane.b32.xlu1 %v3981_v46, %s3519_s23 }
 0x29f   : > { %v1615_v36 = vpop.permute.xlu0 %1614 }
 0x2a0   : > { %v1617_v29 = vpop.permute.xlu1 %1616  ;;  %3010 = vst.msk [vmem:[%s3855_s25 + $0x200] sm:$0xff] %vm682_vm1, %v1615_v36 }
 0x2a1   : > { %3011 = vst.msk [vmem:[%s3855_s25 + $0x208] sm:$0xff] %vm682_vm1, %v1617_v29  ;;  %1829 = vrot.lane.b32.xlu0 %v4026_v59, %s3519_s23 }
 0x2a2   : > { %1831 = vrot.lane.b32.xlu1 %v4015_v56, %s3519_s23 }
 0x2a3   : > { %v1619_v46 = vpop.permute.xlu0 %1618 }
 0x2a4   : > { %v1621_v39 = vpop.permute.xlu1 %1620  ;;  %3012 = vst.msk [vmem:[%s3855_s25 + $0x210] sm:$0xff] %vm682_vm1, %v1619_v46 }
 0x2a5   : > { %3013 = vst.msk [vmem:[%s3855_s25 + $0x218] sm:$0xff] %vm682_vm1, %v1621_v39  ;;  %1833 = vrot.lane.b32.xlu0 %v4044_v63, %s3519_s23 }
 0x2a6   : > { %1835 = vrot.lane.b32.xlu1 %v4035_v60, %s3519_s23 }
 0x2a7   : > { %v1623_v56 = vpop.permute.xlu0 %1622 }
 0x2a8   : > { %v1625_v49 = vpop.permute.xlu1 %1624  ;;  %3014 = vst.msk [vmem:[%s3855_s25 + $0x220] sm:$0xff] %vm682_vm1, %v1623_v56 }
 0x2a9   : > { %3015 = vst.msk [vmem:[%s3855_s25 + $0x228] sm:$0xff] %vm682_vm1, %v1625_v49  ;;  %1837 = vrot.lane.b32.xlu0 %v4062_v11, %s3519_s23 }
 0x2aa   : > { %1839 = vrot.lane.b32.xlu1 %v4053_v8, %s3519_s23 }
 0x2ab   : > { %v1627_v60 = vpop.permute.xlu0 %1626 }
 0x2ac   : > { %v1629_v59 = vpop.permute.xlu1 %1628  ;;  %3016 = vst.msk [vmem:[%s3855_s25 + $0x230] sm:$0xff] %vm682_vm1, %v1627_v60 }
 0x2ad   : > { %3017 = vst.msk [vmem:[%s3855_s25 + $0x238] sm:$0xff] %vm682_vm1, %v1629_v59  ;;  %2123 = vrot.lane.b32.xlu0 %v4430_v6, %s3513_s27 }
 0x2ae   : > { %2125 = vrot.lane.b32.xlu1 %v4421_v4, %s3513_s27 }
 0x2af   : > { %v1631_v8 = vpop.permute.xlu0 %1630 }
 0x2b0   : > { %v1633_v63 = vpop.permute.xlu1 %1632  ;;  %3018 = vst.msk [vmem:[%s3855_s25 + $0x240] sm:$0xff] %vm682_vm1, %v1631_v8 }
 0x2b1   : > { %3019 = vst.msk [vmem:[%s3855_s25 + $0x248] sm:$0xff] %vm682_vm1, %v1633_v63  ;;  %2127 = vrot.lane.b32.xlu0 %v4448_v62, %s3513_s27 }
 0x2b2   : > { %2129 = vrot.lane.b32.xlu1 %v4439_v7, %s3513_s27 }
 0x2b3   : > { %v1635_v43 = vpop.permute.xlu0 %1634 }
 0x2b4   : > { %v1637_v11 = vpop.permute.xlu1 %1636  ;;  %3020 = vst.msk [vmem:[%s3855_s25 + $0x250] sm:$0xff] %vm682_vm1, %v1635_v43 }
 0x2b5   : > { %3021 = vst.msk [vmem:[%s3855_s25 + $0x258] sm:$0xff] %vm682_vm1, %v1637_v11  ;;  %2131 = vrot.lane.b32.xlu0 %v4466_v13, %s3513_s27 }
 0x2b6   : > { %2133 = vrot.lane.b32.xlu1 %v4457_v9, %s3513_s27 }
 0x2b7   : > { %v1639_v45 = vpop.permute.xlu0 %1638 }
 0x2b8   : > { %v1641_v44 = vpop.permute.xlu1 %1640  ;;  %3022 = vst.msk [vmem:[%s3855_s25 + $0x260] sm:$0xff] %vm682_vm1, %v1639_v45 }
 0x2b9   : > { %3023 = vst.msk [vmem:[%s3855_s25 + $0x268] sm:$0xff] %vm682_vm1, %v1641_v44  ;;  %2135 = vrot.lane.b32.xlu0 %v4484_v19, %s3513_s27 }
 0x2ba   : > { %2137 = vrot.lane.b32.xlu1 %v4475_v16, %s3513_s27 }
 0x2bb   : > { %v1643_v48 = vpop.permute.xlu0 %1642 }
 0x2bc   : > { %v1645_v47 = vpop.permute.xlu1 %1644  ;;  %3024 = vst.msk [vmem:[%s3855_s25 + $0x270] sm:$0xff] %vm682_vm1, %v1643_v48 }
 0x2bd   : > { %3025 = vst.msk [vmem:[%s3855_s25 + $0x278] sm:$0xff] %vm682_vm1, %v1645_v47  ;;  %2139 = vrot.lane.b32.xlu0 %v4502_v25, %s3513_s27 }
 0x2be   : > { %2141 = vrot.lane.b32.xlu1 %v4493_v20, %s3513_s27 }
 0x2bf   : > { %v1680_v51 = vpop.permute.xlu0 %1679 }
 0x2c0   : > { %v1682_v50 = vpop.permute.xlu1 %1681  ;;  %3026 = vst.msk [vmem:[%s3855_s25 + $0x280] sm:$0xff] %vm682_vm1, %v1680_v51 }
 0x2c1   : > { %3027 = vst.msk [vmem:[%s3855_s25 + $0x288] sm:$0xff] %vm682_vm1, %v1682_v50  ;;  %2143 = vrot.lane.b32.xlu0 %v4520_v2, %s3513_s27 }
 0x2c2   : > { %2145 = vrot.lane.b32.xlu1 %v4511_v0, %s3513_s27 }
 0x2c3   : > { %v1684_v53 = vpop.permute.xlu0 %1683 }
 0x2c4   : > { %v1686_v52 = vpop.permute.xlu1 %1685  ;;  %3028 = vst.msk [vmem:[%s3855_s25 + $0x290] sm:$0xff] %vm682_vm1, %v1684_v53 }
 0x2c5   : > { %3029 = vst.msk [vmem:[%s3855_s25 + $0x298] sm:$0xff] %vm682_vm1, %v1686_v52  ;;  %2147 = vrot.lane.b32.xlu0 %v4538_v31, %s3513_s27 }
 0x2c6   : > { %2149 = vrot.lane.b32.xlu1 %v4529_v3, %s3513_s27 }
 0x2c7   : > { %v1688_v55 = vpop.permute.xlu0 %1687 }
 0x2c8   : > { %v1690_v54 = vpop.permute.xlu1 %1689  ;;  %3030 = vst.msk [vmem:[%s3855_s25 + $0x2a0] sm:$0xff] %vm682_vm1, %v1688_v55 }
 0x2c9   : > { %3031 = vst.msk [vmem:[%s3855_s25 + $0x2a8] sm:$0xff] %vm682_vm1, %v1690_v54  ;;  %2151 = vrot.lane.b32.xlu0 %v4556_v35, %s3513_s27 }
 0x2ca   : > { %2153 = vrot.lane.b32.xlu1 %v4547_v32, %s3513_s27 }
 0x2cb   : > { %v1692_v5 = vpop.permute.xlu0 %1691 }
 0x2cc   : > { %v1694_v57 = vpop.permute.xlu1 %1693  ;;  %3032 = vst.msk [vmem:[%s3855_s25 + $0x2b0] sm:$0xff] %vm682_vm1, %v1692_v5 }
 0x2cd   : > { %3033 = vst.msk [vmem:[%s3855_s25 + $0x2b8] sm:$0xff] %vm682_vm1, %v1694_v57  ;;  %2188 = vrot.lane.b32.xlu0 %v4430_v6, %s3514_s17 }
 0x2ce   : > { %2190 = vrot.lane.b32.xlu1 %v4421_v4, %s3514_s17 }
 0x2cf   : > { %v1696_v61 = vpop.permute.xlu0 %1695 }
 0x2d0   : > { %v1698_v58 = vpop.permute.xlu1 %1697  ;;  %3034 = vst.msk [vmem:[%s3855_s25 + $0x2c0] sm:$0xff] %vm682_vm1, %v1696_v61 }
 0x2d1   : > { %3035 = vst.msk [vmem:[%s3855_s25 + $0x2c8] sm:$0xff] %vm682_vm1, %v1698_v58  ;;  %2192 = vrot.lane.b32.xlu0 %v4448_v62, %s3514_s17 }
 0x2d2   : > { %2194 = vrot.lane.b32.xlu1 %v4439_v7, %s3514_s17 }
 0x2d3   : > { %v1700_v12 = vpop.permute.xlu0 %1699 }
 0x2d4   : > { %v1702_v10 = vpop.permute.xlu1 %1701  ;;  %3036 = vst.msk [vmem:[%s3855_s25 + $0x2d0] sm:$0xff] %vm682_vm1, %v1700_v12 }
 0x2d5   : > { %3037 = vst.msk [vmem:[%s3855_s25 + $0x2d8] sm:$0xff] %vm682_vm1, %v1702_v10  ;;  %2196 = vrot.lane.b32.xlu0 %v4466_v13, %s3514_s17 }
 0x2d6   : > { %2198 = vrot.lane.b32.xlu1 %v4457_v9, %s3514_s17 }
 0x2d7   : > { %v1704_v18 = vpop.permute.xlu0 %1703 }
 0x2d8   : > { %v1706_v17 = vpop.permute.xlu1 %1705  ;;  %3038 = vst.msk [vmem:[%s3855_s25 + $0x2e0] sm:$0xff] %vm682_vm1, %v1704_v18 }
 0x2d9   : > { %3039 = vst.msk [vmem:[%s3855_s25 + $0x2e8] sm:$0xff] %vm682_vm1, %v1706_v17  ;;  %2200 = vrot.lane.b32.xlu0 %v4484_v19, %s3514_s17 }
 0x2da   : > { %2202 = vrot.lane.b32.xlu1 %v4475_v16, %s3514_s17 }
 0x2db   : > { %v1708_v24 = vpop.permute.xlu0 %1707 }
 0x2dc   : > { %v1710_v21 = vpop.permute.xlu1 %1709  ;;  %3040 = vst.msk [vmem:[%s3855_s25 + $0x2f0] sm:$0xff] %vm682_vm1, %v1708_v24 }
 0x2dd   : > { %3041 = vst.msk [vmem:[%s3855_s25 + $0x2f8] sm:$0xff] %vm682_vm1, %v1710_v21  ;;  %2204 = vrot.lane.b32.xlu0 %v4502_v25, %s3514_s17 }
 0x2de   : > { %2206 = vrot.lane.b32.xlu1 %v4493_v20, %s3514_s17 }
 0x2df   : > { %v1745_v1 = vpop.permute.xlu0 %1744 }
 0x2e0   : > { %v1747_v26 = vpop.permute.xlu1 %1746  ;;  %3042 = vst.msk [vmem:[%s3855_s25 + $0x300] sm:$0xff] %vm682_vm1, %v1745_v1 }
 0x2e1   : > { %3043 = vst.msk [vmem:[%s3855_s25 + $0x308] sm:$0xff] %vm682_vm1, %v1747_v26  ;;  %2208 = vrot.lane.b32.xlu0 %v4520_v2, %s3514_s17 }
 0x2e2   : > { %2210 = vrot.lane.b32.xlu1 %v4511_v0, %s3514_s17 }
 0x2e3   : > { %v1749_v30 = vpop.permute.xlu0 %1748 }
 0x2e4   : > { %v1751_v27 = vpop.permute.xlu1 %1750  ;;  %3044 = vst.msk [vmem:[%s3855_s25 + $0x310] sm:$0xff] %vm682_vm1, %v1749_v30 }
 0x2e5   : > { %3045 = vst.msk [vmem:[%s3855_s25 + $0x318] sm:$0xff] %vm682_vm1, %v1751_v27  ;;  %2212 = vrot.lane.b32.xlu0 %v4538_v31, %s3514_s17 }
 0x2e6   : > { %2214 = vrot.lane.b32.xlu1 %v4529_v3, %s3514_s17 }
 0x2e7   : > { %v1753_v34 = vpop.permute.xlu0 %1752 }
 0x2e8   : > { %v1755_v33 = vpop.permute.xlu1 %1754  ;;  %3046 = vst.msk [vmem:[%s3855_s25 + $0x320] sm:$0xff] %vm682_vm1, %v1753_v34 }
 0x2e9   : > { %3047 = vst.msk [vmem:[%s3855_s25 + $0x328] sm:$0xff] %vm682_vm1, %v1755_v33  ;;  %2216 = vrot.lane.b32.xlu0 %v4556_v35, %s3514_s17 }
 0x2ea   : > { %2218 = vrot.lane.b32.xlu1 %v4547_v32, %s3514_s17 }
 0x2eb   : > { %v1757_v38 = vpop.permute.xlu0 %1756 }
 0x2ec   : > { %v1759_v37 = vpop.permute.xlu1 %1758  ;;  %3048 = vst.msk [vmem:[%s3855_s25 + $0x330] sm:$0xff] %vm682_vm1, %v1757_v38 }
 0x2ed   : > { %3049 = vst.msk [vmem:[%s3855_s25 + $0x338] sm:$0xff] %vm682_vm1, %v1759_v37  ;;  %2253 = vrot.lane.b32.xlu0 %v4430_v6, %s3515_s18 }
 0x2ee   : > { %2255 = vrot.lane.b32.xlu1 %v4421_v4, %s3515_s18 }
 0x2ef   : > { %v1761_v41 = vpop.permute.xlu0 %1760 }
 0x2f0   : > { %v1763_v40 = vpop.permute.xlu1 %1762  ;;  %3050 = vst.msk [vmem:[%s3855_s25 + $0x340] sm:$0xff] %vm682_vm1, %v1761_v41 }
 0x2f1   : > { %3051 = vst.msk [vmem:[%s3855_s25 + $0x348] sm:$0xff] %vm682_vm1, %v1763_v40  ;;  %2257 = vrot.lane.b32.xlu0 %v4448_v62, %s3515_s18 }
 0x2f2   : > { %2259 = vrot.lane.b32.xlu1 %v4439_v7, %s3515_s18 }
 0x2f3   : > { %v1765_v42 = vpop.permute.xlu0 %1764 }
 0x2f4   : > { %v1767_v14 = vpop.permute.xlu1 %1766  ;;  %3052 = vst.msk [vmem:[%s3855_s25 + $0x350] sm:$0xff] %vm682_vm1, %v1765_v42 }
 0x2f5   : > { %3053 = vst.msk [vmem:[%s3855_s25 + $0x358] sm:$0xff] %vm682_vm1, %v1767_v14  ;;  %2261 = vrot.lane.b32.xlu0 %v4466_v13, %s3515_s18 }
 0x2f6   : > { %2263 = vrot.lane.b32.xlu1 %v4457_v9, %s3515_s18 }
 0x2f7   : > { %v1769_v22 = vpop.permute.xlu0 %1768 }
 0x2f8   : > { %v1771_v15 = vpop.permute.xlu1 %1770  ;;  %3054 = vst.msk [vmem:[%s3855_s25 + $0x360] sm:$0xff] %vm682_vm1, %v1769_v22 }
 0x2f9   : > { %3055 = vst.msk [vmem:[%s3855_s25 + $0x368] sm:$0xff] %vm682_vm1, %v1771_v15  ;;  %2265 = vrot.lane.b32.xlu0 %v4484_v19, %s3515_s18 }
 0x2fa   : > { %2267 = vrot.lane.b32.xlu1 %v4475_v16, %s3515_s18 }
 0x2fb   : > { %v1773_v28 = vpop.permute.xlu0 %1772 }
 0x2fc   : > { %v1775_v23 = vpop.permute.xlu1 %1774  ;;  %3056 = vst.msk [vmem:[%s3855_s25 + $0x370] sm:$0xff] %vm682_vm1, %v1773_v28 }
 0x2fd   : > { %3057 = vst.msk [vmem:[%s3855_s25 + $0x378] sm:$0xff] %vm682_vm1, %v1775_v23  ;;  %2269 = vrot.lane.b32.xlu0 %v4502_v25, %s3515_s18 }
 0x2fe   : > { %2271 = vrot.lane.b32.xlu1 %v4493_v20, %s3515_s18 }
 0x2ff   : > { %v1810_v36 = vpop.permute.xlu0 %1809 }
 0x300   : > { %v1812_v29 = vpop.permute.xlu1 %1811  ;;  %3058 = vst.msk [vmem:[%s3855_s25 + $0x380] sm:$0xff] %vm682_vm1, %v1810_v36 }
 0x301   : > { %3059 = vst.msk [vmem:[%s3855_s25 + $0x388] sm:$0xff] %vm682_vm1, %v1812_v29  ;;  %2273 = vrot.lane.b32.xlu0 %v4520_v2, %s3515_s18 }
 0x302   : > { %2275 = vrot.lane.b32.xlu1 %v4511_v0, %s3515_s18 }
 0x303   : > { %v1814_v46 = vpop.permute.xlu0 %1813 }
 0x304   : > { %v1816_v39 = vpop.permute.xlu1 %1815  ;;  %3060 = vst.msk [vmem:[%s3855_s25 + $0x390] sm:$0xff] %vm682_vm1, %v1814_v46 }
 0x305   : > { %3061 = vst.msk [vmem:[%s3855_s25 + $0x398] sm:$0xff] %vm682_vm1, %v1816_v39  ;;  %2277 = vrot.lane.b32.xlu0 %v4538_v31, %s3515_s18 }
 0x306   : > { %2279 = vrot.lane.b32.xlu1 %v4529_v3, %s3515_s18 }
 0x307   : > { %v1818_v56 = vpop.permute.xlu0 %1817 }
 0x308   : > { %v1820_v49 = vpop.permute.xlu1 %1819  ;;  %3062 = vst.msk [vmem:[%s3855_s25 + $0x3a0] sm:$0xff] %vm682_vm1, %v1818_v56 }
 0x309   : > { %3063 = vst.msk [vmem:[%s3855_s25 + $0x3a8] sm:$0xff] %vm682_vm1, %v1820_v49  ;;  %2281 = vrot.lane.b32.xlu0 %v4556_v35, %s3515_s18 }
 0x30a   : > { %2283 = vrot.lane.b32.xlu1 %v4547_v32, %s3515_s18 }
 0x30b   : > { %v1822_v60 = vpop.permute.xlu0 %1821 }
 0x30c   : > { %v1824_v59 = vpop.permute.xlu1 %1823  ;;  %3064 = vst.msk [vmem:[%s3855_s25 + $0x3b0] sm:$0xff] %vm682_vm1, %v1822_v60 }
 0x30d   : > { %3065 = vst.msk [vmem:[%s3855_s25 + $0x3b8] sm:$0xff] %vm682_vm1, %v1824_v59  ;;  %2318 = vrot.lane.b32.xlu0 %v4430_v6, %s3516_s19 }
 0x30e   : > { %2320 = vrot.lane.b32.xlu1 %v4421_v4, %s3516_s19 }
 0x30f   : > { %v1826_v8 = vpop.permute.xlu0 %1825 }
 0x310   : > { %v1828_v63 = vpop.permute.xlu1 %1827  ;;  %3066 = vst.msk [vmem:[%s3855_s25 + $0x3c0] sm:$0xff] %vm682_vm1, %v1826_v8 }
 0x311   : > { %3067 = vst.msk [vmem:[%s3855_s25 + $0x3c8] sm:$0xff] %vm682_vm1, %v1828_v63  ;;  %2322 = vrot.lane.b32.xlu0 %v4448_v62, %s3516_s19 }
 0x312   : > { %2324 = vrot.lane.b32.xlu1 %v4439_v7, %s3516_s19 }
 0x313   : > { %v1830_v43 = vpop.permute.xlu0 %1829 }
 0x314   : > { %v1832_v11 = vpop.permute.xlu1 %1831  ;;  %3068 = vst.msk [vmem:[%s3855_s25 + $0x3d0] sm:$0xff] %vm682_vm1, %v1830_v43 }
 0x315   : > { %3069 = vst.msk [vmem:[%s3855_s25 + $0x3d8] sm:$0xff] %vm682_vm1, %v1832_v11  ;;  %2326 = vrot.lane.b32.xlu0 %v4466_v13, %s3516_s19 }
 0x316   : > { %2328 = vrot.lane.b32.xlu1 %v4457_v9, %s3516_s19 }
 0x317   : > { %v1834_v45 = vpop.permute.xlu0 %1833 }
 0x318   : > { %v1836_v44 = vpop.permute.xlu1 %1835  ;;  %3070 = vst.msk [vmem:[%s3855_s25 + $0x3e0] sm:$0xff] %vm682_vm1, %v1834_v45 }
 0x319   : > { %3071 = vst.msk [vmem:[%s3855_s25 + $0x3e8] sm:$0xff] %vm682_vm1, %v1836_v44  ;;  %2330 = vrot.lane.b32.xlu0 %v4484_v19, %s3516_s19 }
 0x31a   : > { %2332 = vrot.lane.b32.xlu1 %v4475_v16, %s3516_s19 }
 0x31b   : > { %v1838_v48 = vpop.permute.xlu0 %1837 }
 0x31c   : > { %v1840_v47 = vpop.permute.xlu1 %1839  ;;  %3072 = vst.msk [vmem:[%s3855_s25 + $0x3f0] sm:$0xff] %vm682_vm1, %v1838_v48 }
 0x31d   : > { %3073 = vst.msk [vmem:[%s3855_s25 + $0x3f8] sm:$0xff] %vm682_vm1, %v1840_v47  ;;  %2334 = vrot.lane.b32.xlu0 %v4502_v25, %s3516_s19 }
 0x31e   : > { %2336 = vrot.lane.b32.xlu1 %v4493_v20, %s3516_s19 }
 0x31f   : > { %v2124_v51 = vpop.permute.xlu0 %2123 }
 0x320   : > { %v2126_v50 = vpop.permute.xlu1 %2125  ;;  %3090 = vst.msk [vmem:[%s4419_s12 + $0x80] sm:$0xff] %vm682_vm1, %v2124_v51 }
 0x321   : > { %3091 = vst.msk [vmem:[%s4419_s12 + $0x88] sm:$0xff] %vm682_vm1, %v2126_v50  ;;  %2338 = vrot.lane.b32.xlu0 %v4520_v2, %s3516_s19 }
 0x322   : > { %2340 = vrot.lane.b32.xlu1 %v4511_v0, %s3516_s19 }
 0x323   : > { %v2128_v53 = vpop.permute.xlu0 %2127 }
 0x324   : > { %v2130_v52 = vpop.permute.xlu1 %2129  ;;  %3092 = vst.msk [vmem:[%s4419_s12 + $0x90] sm:$0xff] %vm682_vm1, %v2128_v53 }
 0x325   : > { %3093 = vst.msk [vmem:[%s4419_s12 + $0x98] sm:$0xff] %vm682_vm1, %v2130_v52  ;;  %2342 = vrot.lane.b32.xlu0 %v4538_v31, %s3516_s19 }
 0x326   : > { %2344 = vrot.lane.b32.xlu1 %v4529_v3, %s3516_s19 }
 0x327   : > { %v2132_v55 = vpop.permute.xlu0 %2131 }
 0x328   : > { %v2134_v54 = vpop.permute.xlu1 %2133  ;;  %3094 = vst.msk [vmem:[%s4419_s12 + $0xa0] sm:$0xff] %vm682_vm1, %v2132_v55 }
 0x329   : > { %3095 = vst.msk [vmem:[%s4419_s12 + $0xa8] sm:$0xff] %vm682_vm1, %v2134_v54  ;;  %2346 = vrot.lane.b32.xlu0 %v4556_v35, %s3516_s19 }
 0x32a   : > { %2348 = vrot.lane.b32.xlu1 %v4547_v32, %s3516_s19 }
 0x32b   : > { %v2136_v5 = vpop.permute.xlu0 %2135 }
 0x32c   : > { %v2138_v57 = vpop.permute.xlu1 %2137  ;;  %3096 = vst.msk [vmem:[%s4419_s12 + $0xb0] sm:$0xff] %vm682_vm1, %v2136_v5 }
 0x32d   : > { %3097 = vst.msk [vmem:[%s4419_s12 + $0xb8] sm:$0xff] %vm682_vm1, %v2138_v57  ;;  %2383 = vrot.lane.b32.xlu0 %v4430_v6, %s3517_s20 }
 0x32e   : > { %2385 = vrot.lane.b32.xlu1 %v4421_v4, %s3517_s20 }
 0x32f   : > { %v2140_v61 = vpop.permute.xlu0 %2139 }
 0x330   : > { %v2142_v58 = vpop.permute.xlu1 %2141  ;;  %3098 = vst.msk [vmem:[%s4419_s12 + $0xc0] sm:$0xff] %vm682_vm1, %v2140_v61 }
 0x331   : > { %3099 = vst.msk [vmem:[%s4419_s12 + $0xc8] sm:$0xff] %vm682_vm1, %v2142_v58  ;;  %2387 = vrot.lane.b32.xlu0 %v4448_v62, %s3517_s20 }
 0x332   : > { %2389 = vrot.lane.b32.xlu1 %v4439_v7, %s3517_s20 }
 0x333   : > { %v2144_v12 = vpop.permute.xlu0 %2143 }
 0x334   : > { %v2146_v10 = vpop.permute.xlu1 %2145  ;;  %3100 = vst.msk [vmem:[%s4419_s12 + $0xd0] sm:$0xff] %vm682_vm1, %v2144_v12 }
 0x335   : > { %3101 = vst.msk [vmem:[%s4419_s12 + $0xd8] sm:$0xff] %vm682_vm1, %v2146_v10  ;;  %2391 = vrot.lane.b32.xlu0 %v4466_v13, %s3517_s20 }
 0x336   : > { %2393 = vrot.lane.b32.xlu1 %v4457_v9, %s3517_s20 }
 0x337   : > { %v2148_v18 = vpop.permute.xlu0 %2147 }
 0x338   : > { %v2150_v17 = vpop.permute.xlu1 %2149  ;;  %3102 = vst.msk [vmem:[%s4419_s12 + $0xe0] sm:$0xff] %vm682_vm1, %v2148_v18 }
 0x339   : > { %3103 = vst.msk [vmem:[%s4419_s12 + $0xe8] sm:$0xff] %vm682_vm1, %v2150_v17  ;;  %2395 = vrot.lane.b32.xlu0 %v4484_v19, %s3517_s20 }
 0x33a   : > { %2397 = vrot.lane.b32.xlu1 %v4475_v16, %s3517_s20 }
 0x33b   : > { %v2152_v24 = vpop.permute.xlu0 %2151 }
 0x33c   : > { %v2154_v21 = vpop.permute.xlu1 %2153  ;;  %3104 = vst.msk [vmem:[%s4419_s12 + $0xf0] sm:$0xff] %vm682_vm1, %v2152_v24 }
 0x33d   : > { %3105 = vst.msk [vmem:[%s4419_s12 + $0xf8] sm:$0xff] %vm682_vm1, %v2154_v21  ;;  %2399 = vrot.lane.b32.xlu0 %v4502_v25, %s3517_s20 }
 0x33e   : > { %2401 = vrot.lane.b32.xlu1 %v4493_v20, %s3517_s20 }
 0x33f   : > { %v2189_v1 = vpop.permute.xlu0 %2188 }
 0x340   : > { %v2191_v26 = vpop.permute.xlu1 %2190  ;;  %3106 = vst.msk [vmem:[%s4419_s12 + $0x100] sm:$0xff] %vm682_vm1, %v2189_v1 }
 0x341   : > { %3107 = vst.msk [vmem:[%s4419_s12 + $0x108] sm:$0xff] %vm682_vm1, %v2191_v26  ;;  %2403 = vrot.lane.b32.xlu0 %v4520_v2, %s3517_s20 }
 0x342   : > { %2405 = vrot.lane.b32.xlu1 %v4511_v0, %s3517_s20 }
 0x343   : > { %v2193_v30 = vpop.permute.xlu0 %2192 }
 0x344   : > { %v2195_v27 = vpop.permute.xlu1 %2194  ;;  %3108 = vst.msk [vmem:[%s4419_s12 + $0x110] sm:$0xff] %vm682_vm1, %v2193_v30 }
 0x345   : > { %3109 = vst.msk [vmem:[%s4419_s12 + $0x118] sm:$0xff] %vm682_vm1, %v2195_v27  ;;  %2407 = vrot.lane.b32.xlu0 %v4538_v31, %s3517_s20 }
 0x346   : > { %2409 = vrot.lane.b32.xlu1 %v4529_v3, %s3517_s20 }
 0x347   : > { %v2197_v34 = vpop.permute.xlu0 %2196 }
 0x348   : > { %v2199_v33 = vpop.permute.xlu1 %2198  ;;  %3110 = vst.msk [vmem:[%s4419_s12 + $0x120] sm:$0xff] %vm682_vm1, %v2197_v34 }
 0x349   : > { %3111 = vst.msk [vmem:[%s4419_s12 + $0x128] sm:$0xff] %vm682_vm1, %v2199_v33  ;;  %2411 = vrot.lane.b32.xlu0 %v4556_v35, %s3517_s20 }
 0x34a   : > { %2413 = vrot.lane.b32.xlu1 %v4547_v32, %s3517_s20 }
 0x34b   : > { %v2201_v38 = vpop.permute.xlu0 %2200 }
 0x34c   : > { %v2203_v37 = vpop.permute.xlu1 %2202  ;;  %3112 = vst.msk [vmem:[%s4419_s12 + $0x130] sm:$0xff] %vm682_vm1, %v2201_v38 }
 0x34d   : > { %3113 = vst.msk [vmem:[%s4419_s12 + $0x138] sm:$0xff] %vm682_vm1, %v2203_v37  ;;  %2448 = vrot.lane.b32.xlu0 %v4430_v6, %s3518_s22 }
 0x34e   : > { %2450 = vrot.lane.b32.xlu1 %v4421_v4, %s3518_s22 }
 0x34f   : > { %v2205_v41 = vpop.permute.xlu0 %2204 }
 0x350   : > { %v2207_v40 = vpop.permute.xlu1 %2206  ;;  %3114 = vst.msk [vmem:[%s4419_s12 + $0x140] sm:$0xff] %vm682_vm1, %v2205_v41 }
 0x351   : > { %3115 = vst.msk [vmem:[%s4419_s12 + $0x148] sm:$0xff] %vm682_vm1, %v2207_v40  ;;  %2452 = vrot.lane.b32.xlu0 %v4448_v62, %s3518_s22 }
 0x352   : > { %2454 = vrot.lane.b32.xlu1 %v4439_v7, %s3518_s22 }
 0x353   : > { %v2209_v42 = vpop.permute.xlu0 %2208 }
 0x354   : > { %v2211_v14 = vpop.permute.xlu1 %2210  ;;  %3116 = vst.msk [vmem:[%s4419_s12 + $0x150] sm:$0xff] %vm682_vm1, %v2209_v42 }
 0x355   : > { %3117 = vst.msk [vmem:[%s4419_s12 + $0x158] sm:$0xff] %vm682_vm1, %v2211_v14  ;;  %2456 = vrot.lane.b32.xlu0 %v4466_v13, %s3518_s22 }
 0x356   : > { %2458 = vrot.lane.b32.xlu1 %v4457_v9, %s3518_s22 }
 0x357   : > { %v2213_v22 = vpop.permute.xlu0 %2212 }
 0x358   : > { %v2215_v15 = vpop.permute.xlu1 %2214  ;;  %3118 = vst.msk [vmem:[%s4419_s12 + $0x160] sm:$0xff] %vm682_vm1, %v2213_v22 }
 0x359   : > { %3119 = vst.msk [vmem:[%s4419_s12 + $0x168] sm:$0xff] %vm682_vm1, %v2215_v15  ;;  %2460 = vrot.lane.b32.xlu0 %v4484_v19, %s3518_s22 }
 0x35a   : > { %2462 = vrot.lane.b32.xlu1 %v4475_v16, %s3518_s22 }
 0x35b   : > { %v2217_v28 = vpop.permute.xlu0 %2216 }
 0x35c   : > { %v2219_v23 = vpop.permute.xlu1 %2218  ;;  %3120 = vst.msk [vmem:[%s4419_s12 + $0x170] sm:$0xff] %vm682_vm1, %v2217_v28 }
 0x35d   : > { %3121 = vst.msk [vmem:[%s4419_s12 + $0x178] sm:$0xff] %vm682_vm1, %v2219_v23  ;;  %2464 = vrot.lane.b32.xlu0 %v4502_v25, %s3518_s22 }
 0x35e   : > { %2466 = vrot.lane.b32.xlu1 %v4493_v20, %s3518_s22 }
 0x35f   : > { %v2254_v36 = vpop.permute.xlu0 %2253 }
 0x360   : > { %v2256_v29 = vpop.permute.xlu1 %2255  ;;  %3122 = vst.msk [vmem:[%s4419_s12 + $0x180] sm:$0xff] %vm682_vm1, %v2254_v36 }
 0x361   : > { %3123 = vst.msk [vmem:[%s4419_s12 + $0x188] sm:$0xff] %vm682_vm1, %v2256_v29  ;;  %2468 = vrot.lane.b32.xlu0 %v4520_v2, %s3518_s22 }
 0x362   : > { %2470 = vrot.lane.b32.xlu1 %v4511_v0, %s3518_s22 }
 0x363   : > { %v2258_v46 = vpop.permute.xlu0 %2257 }
 0x364   : > { %v2260_v39 = vpop.permute.xlu1 %2259  ;;  %3124 = vst.msk [vmem:[%s4419_s12 + $0x190] sm:$0xff] %vm682_vm1, %v2258_v46 }
 0x365   : > { %3125 = vst.msk [vmem:[%s4419_s12 + $0x198] sm:$0xff] %vm682_vm1, %v2260_v39  ;;  %2472 = vrot.lane.b32.xlu0 %v4538_v31, %s3518_s22 }
 0x366   : > { %2474 = vrot.lane.b32.xlu1 %v4529_v3, %s3518_s22 }
 0x367   : > { %v2262_v56 = vpop.permute.xlu0 %2261 }
 0x368   : > { %v2264_v49 = vpop.permute.xlu1 %2263  ;;  %3126 = vst.msk [vmem:[%s4419_s12 + $0x1a0] sm:$0xff] %vm682_vm1, %v2262_v56 }
 0x369   : > { %3127 = vst.msk [vmem:[%s4419_s12 + $0x1a8] sm:$0xff] %vm682_vm1, %v2264_v49  ;;  %2476 = vrot.lane.b32.xlu0 %v4556_v35, %s3518_s22 }
 0x36a   : > { %2478 = vrot.lane.b32.xlu1 %v4547_v32, %s3518_s22 }
 0x36b   : > { %v2266_v60 = vpop.permute.xlu0 %2265 }
 0x36c   : > { %v2268_v59 = vpop.permute.xlu1 %2267  ;;  %3128 = vst.msk [vmem:[%s4419_s12 + $0x1b0] sm:$0xff] %vm682_vm1, %v2266_v60 }
 0x36d   : > { %3129 = vst.msk [vmem:[%s4419_s12 + $0x1b8] sm:$0xff] %vm682_vm1, %v2268_v59  ;;  %2513 = vrot.lane.b32.xlu0 %v4430_v6, %s3519_s23 }
 0x36e   : > { %2515 = vrot.lane.b32.xlu1 %v4421_v4, %s3519_s23 }
 0x36f   : > { %v2270_v8 = vpop.permute.xlu0 %2269 }
 0x370   : > { %v2272_v63 = vpop.permute.xlu1 %2271  ;;  %3130 = vst.msk [vmem:[%s4419_s12 + $0x1c0] sm:$0xff] %vm682_vm1, %v2270_v8 }
 0x371   : > { %3131 = vst.msk [vmem:[%s4419_s12 + $0x1c8] sm:$0xff] %vm682_vm1, %v2272_v63  ;;  %2517 = vrot.lane.b32.xlu0 %v4448_v62, %s3519_s23 }
 0x372   : > { %2519 = vrot.lane.b32.xlu1 %v4439_v7, %s3519_s23 }
 0x373   : > { %v2274_v11 = vpop.permute.xlu0 %2273 }
 0x374   : > { %v2276_v4 = vpop.permute.xlu1 %2275  ;;  %3132 = vst.msk [vmem:[%s4419_s12 + $0x1d0] sm:$0xff] %vm682_vm1, %v2274_v11 }
 0x375   : > { %3133 = vst.msk [vmem:[%s4419_s12 + $0x1d8] sm:$0xff] %vm682_vm1, %v2276_v4  ;;  %2521 = vrot.lane.b32.xlu0 %v4466_v13, %s3519_s23 }
 0x376   : > { %2523 = vrot.lane.b32.xlu1 %v4457_v9, %s3519_s23 }
 0x377   : > { %v2278_v7 = vpop.permute.xlu0 %2277 }
 0x378   : > { %v2280_v6 = vpop.permute.xlu1 %2279  ;;  %3134 = vst.msk [vmem:[%s4419_s12 + $0x1e0] sm:$0xff] %vm682_vm1, %v2278_v7 }
 0x379   : > { %3135 = vst.msk [vmem:[%s4419_s12 + $0x1e8] sm:$0xff] %vm682_vm1, %v2280_v6  ;;  %2525 = vrot.lane.b32.xlu0 %v4484_v19, %s3519_s23 }
 0x37a   : > { %2527 = vrot.lane.b32.xlu1 %v4475_v16, %s3519_s23 }
 0x37b   : > { %v2282_v9 = vpop.permute.xlu0 %2281 }
 0x37c   : > { %v2284_v62 = vpop.permute.xlu1 %2283  ;;  %3136 = vst.msk [vmem:[%s4419_s12 + $0x1f0] sm:$0xff] %vm682_vm1, %v2282_v9 }
 0x37d   : > { %3137 = vst.msk [vmem:[%s4419_s12 + $0x1f8] sm:$0xff] %vm682_vm1, %v2284_v62  ;;  %2529 = vrot.lane.b32.xlu0 %v4502_v25, %s3519_s23 }
 0x37e   : > { %2531 = vrot.lane.b32.xlu1 %v4493_v20, %s3519_s23 }
 0x37f   : > { %v2319_v16 = vpop.permute.xlu0 %2318 }
 0x380   : > { %v2321_v13 = vpop.permute.xlu1 %2320  ;;  %3138 = vst.msk [vmem:[%s4419_s12 + $0x200] sm:$0xff] %vm682_vm1, %v2319_v16 }
 0x381   : > { %3139 = vst.msk [vmem:[%s4419_s12 + $0x208] sm:$0xff] %vm682_vm1, %v2321_v13  ;;  %2533 = vrot.lane.b32.xlu0 %v4520_v2, %s3519_s23 }
 0x382   : > { %2535 = vrot.lane.b32.xlu1 %v4511_v0, %s3519_s23 }
 0x383   : > { %v2323_v20 = vpop.permute.xlu0 %2322 }
 0x384   : > { %v2325_v19 = vpop.permute.xlu1 %2324  ;;  %3140 = vst.msk [vmem:[%s4419_s12 + $0x210] sm:$0xff] %vm682_vm1, %v2323_v20 }
 0x385   : > { %3141 = vst.msk [vmem:[%s4419_s12 + $0x218] sm:$0xff] %vm682_vm1, %v2325_v19  ;;  %2537 = vrot.lane.b32.xlu0 %v4538_v31, %s3519_s23 }
 0x386   : > { %2539 = vrot.lane.b32.xlu1 %v4529_v3, %s3519_s23 }
 0x387   : > { %v2327_v0 = vpop.permute.xlu0 %2326 }
 0x388   : > { %v2329_v25 = vpop.permute.xlu1 %2328  ;;  %3142 = vst.msk [vmem:[%s4419_s12 + $0x220] sm:$0xff] %vm682_vm1, %v2327_v0 }
 0x389   : > { %3143 = vst.msk [vmem:[%s4419_s12 + $0x228] sm:$0xff] %vm682_vm1, %v2329_v25  ;;  %2541 = vrot.lane.b32.xlu0 %v4556_v35, %s3519_s23 }
 0x38a   : > { %2543 = vrot.lane.b32.xlu1 %v4547_v32, %s3519_s23 }
 0x38b   : > { %v2331_v3 = vpop.permute.xlu0 %2330 }
 0x38c   : > { %v2333_v2 = vpop.permute.xlu1 %2332  ;;  %3144 = vst.msk [vmem:[%s4419_s12 + $0x230] sm:$0xff] %vm682_vm1, %v2331_v3 }
 0x38d   : > { %3145 = vst.msk [vmem:[%s4419_s12 + $0x238] sm:$0xff] %vm682_vm1, %v2333_v2 }
 0x38f   : > { %v2335_v43 = vpop.permute.xlu0 %2334 }
 0x390   : > { %v2337_v31 = vpop.permute.xlu1 %2336  ;;  %3146 = vst.msk [vmem:[%s4419_s12 + $0x240] sm:$0xff] %vm682_vm1, %v2335_v43 }
 0x391   : > { %3147 = vst.msk [vmem:[%s4419_s12 + $0x248] sm:$0xff] %vm682_vm1, %v2337_v31 }
 0x393   : > { %v2339_v44 = vpop.permute.xlu0 %2338 }
 0x394   : > { %v2341_v32 = vpop.permute.xlu1 %2340  ;;  %3148 = vst.msk [vmem:[%s4419_s12 + $0x250] sm:$0xff] %vm682_vm1, %v2339_v44 }
 0x395   : > { %3149 = vst.msk [vmem:[%s4419_s12 + $0x258] sm:$0xff] %vm682_vm1, %v2341_v32 }
 0x397   : > { %v2343_v45 = vpop.permute.xlu0 %2342 }
 0x398   : > { %v2345_v35 = vpop.permute.xlu1 %2344  ;;  %3150 = vst.msk [vmem:[%s4419_s12 + $0x260] sm:$0xff] %vm682_vm1, %v2343_v45 }
 0x399   : > { %3151 = vst.msk [vmem:[%s4419_s12 + $0x268] sm:$0xff] %vm682_vm1, %v2345_v35 }
 0x39b   : > { %v2347_v48 = vpop.permute.xlu0 %2346 }
 0x39c   : > { %v2349_v47 = vpop.permute.xlu1 %2348  ;;  %3152 = vst.msk [vmem:[%s4419_s12 + $0x270] sm:$0xff] %vm682_vm1, %v2347_v48 }
 0x39d   : > { %3153 = vst.msk [vmem:[%s4419_s12 + $0x278] sm:$0xff] %vm682_vm1, %v2349_v47 }
 0x39f   : > { %v2384_v51 = vpop.permute.xlu0 %2383 }
 0x3a0   : > { %v2386_v50 = vpop.permute.xlu1 %2385  ;;  %3154 = vst.msk [vmem:[%s4419_s12 + $0x280] sm:$0xff] %vm682_vm1, %v2384_v51 }
 0x3a1   : > { %3155 = vst.msk [vmem:[%s4419_s12 + $0x288] sm:$0xff] %vm682_vm1, %v2386_v50 }
 0x3a3   : > { %v2388_v53 = vpop.permute.xlu0 %2387 }
 0x3a4   : > { %v2390_v52 = vpop.permute.xlu1 %2389  ;;  %3156 = vst.msk [vmem:[%s4419_s12 + $0x290] sm:$0xff] %vm682_vm1, %v2388_v53 }
 0x3a5   : > { %3157 = vst.msk [vmem:[%s4419_s12 + $0x298] sm:$0xff] %vm682_vm1, %v2390_v52 }
 0x3a7   : > { %v2392_v55 = vpop.permute.xlu0 %2391 }
 0x3a8   : > { %v2394_v54 = vpop.permute.xlu1 %2393  ;;  %3158 = vst.msk [vmem:[%s4419_s12 + $0x2a0] sm:$0xff] %vm682_vm1, %v2392_v55 }
 0x3a9   : > { %3159 = vst.msk [vmem:[%s4419_s12 + $0x2a8] sm:$0xff] %vm682_vm1, %v2394_v54 }
 0x3ab   : > { %v2396_v5 = vpop.permute.xlu0 %2395 }
 0x3ac   : > { %v2398_v57 = vpop.permute.xlu1 %2397  ;;  %3160 = vst.msk [vmem:[%s4419_s12 + $0x2b0] sm:$0xff] %vm682_vm1, %v2396_v5 }
 0x3ad   : > { %3161 = vst.msk [vmem:[%s4419_s12 + $0x2b8] sm:$0xff] %vm682_vm1, %v2398_v57 }
 0x3af   : > { %v2400_v61 = vpop.permute.xlu0 %2399 }
 0x3b0   : > { %v2402_v58 = vpop.permute.xlu1 %2401  ;;  %3162 = vst.msk [vmem:[%s4419_s12 + $0x2c0] sm:$0xff] %vm682_vm1, %v2400_v61 }
 0x3b1   : > { %3163 = vst.msk [vmem:[%s4419_s12 + $0x2c8] sm:$0xff] %vm682_vm1, %v2402_v58 }
 0x3b3   : > { %v2404_v12 = vpop.permute.xlu0 %2403 }
 0x3b4   : > { %v2406_v10 = vpop.permute.xlu1 %2405  ;;  %3164 = vst.msk [vmem:[%s4419_s12 + $0x2d0] sm:$0xff] %vm682_vm1, %v2404_v12 }
 0x3b5   : > { %3165 = vst.msk [vmem:[%s4419_s12 + $0x2d8] sm:$0xff] %vm682_vm1, %v2406_v10 }
 0x3b7   : > { %v2408_v18 = vpop.permute.xlu0 %2407 }
 0x3b8   : > { %v2410_v17 = vpop.permute.xlu1 %2409  ;;  %3166 = vst.msk [vmem:[%s4419_s12 + $0x2e0] sm:$0xff] %vm682_vm1, %v2408_v18 }
 0x3b9   : > { %3167 = vst.msk [vmem:[%s4419_s12 + $0x2e8] sm:$0xff] %vm682_vm1, %v2410_v17 }
 0x3bb   : > { %v2412_v24 = vpop.permute.xlu0 %2411 }
 0x3bc   : > { %v2414_v21 = vpop.permute.xlu1 %2413  ;;  %3168 = vst.msk [vmem:[%s4419_s12 + $0x2f0] sm:$0xff] %vm682_vm1, %v2412_v24 }
 0x3bd   : > { %3169 = vst.msk [vmem:[%s4419_s12 + $0x2f8] sm:$0xff] %vm682_vm1, %v2414_v21 }
 0x3bf   : > { %v2449_v1 = vpop.permute.xlu0 %2448 }
 0x3c0   : > { %v2451_v26 = vpop.permute.xlu1 %2450  ;;  %3170 = vst.msk [vmem:[%s4419_s12 + $0x300] sm:$0xff] %vm682_vm1, %v2449_v1 }
 0x3c1   : > { %3171 = vst.msk [vmem:[%s4419_s12 + $0x308] sm:$0xff] %vm682_vm1, %v2451_v26 }
 0x3c3   : > { %v2453_v30 = vpop.permute.xlu0 %2452 }
 0x3c4   : > { %v2455_v27 = vpop.permute.xlu1 %2454  ;;  %3172 = vst.msk [vmem:[%s4419_s12 + $0x310] sm:$0xff] %vm682_vm1, %v2453_v30 }
 0x3c5   : > { %3173 = vst.msk [vmem:[%s4419_s12 + $0x318] sm:$0xff] %vm682_vm1, %v2455_v27 }
 0x3c7   : > { %v2457_v34 = vpop.permute.xlu0 %2456 }
 0x3c8   : > { %v2459_v33 = vpop.permute.xlu1 %2458  ;;  %3174 = vst.msk [vmem:[%s4419_s12 + $0x320] sm:$0xff] %vm682_vm1, %v2457_v34 }
 0x3c9   : > { %3175 = vst.msk [vmem:[%s4419_s12 + $0x328] sm:$0xff] %vm682_vm1, %v2459_v33 }
 0x3cb   : > { %v2461_v38 = vpop.permute.xlu0 %2460 }
 0x3cc   : > { %v2463_v37 = vpop.permute.xlu1 %2462  ;;  %3176 = vst.msk [vmem:[%s4419_s12 + $0x330] sm:$0xff] %vm682_vm1, %v2461_v38 }
 0x3cd   : > { %3177 = vst.msk [vmem:[%s4419_s12 + $0x338] sm:$0xff] %vm682_vm1, %v2463_v37 }
 0x3cf   : > { %v2465_v41 = vpop.permute.xlu0 %2464 }
 0x3d0   : > { %v2467_v40 = vpop.permute.xlu1 %2466  ;;  %3178 = vst.msk [vmem:[%s4419_s12 + $0x340] sm:$0xff] %vm682_vm1, %v2465_v41 }
 0x3d1   : > { %3179 = vst.msk [vmem:[%s4419_s12 + $0x348] sm:$0xff] %vm682_vm1, %v2467_v40 }
 0x3d3   : > { %v2469_v42 = vpop.permute.xlu0 %2468 }
 0x3d4   : > { %v2471_v14 = vpop.permute.xlu1 %2470  ;;  %3180 = vst.msk [vmem:[%s4419_s12 + $0x350] sm:$0xff] %vm682_vm1, %v2469_v42 }
 0x3d5   : > { %3181 = vst.msk [vmem:[%s4419_s12 + $0x358] sm:$0xff] %vm682_vm1, %v2471_v14 }
 0x3d7   : > { %v2473_v22 = vpop.permute.xlu0 %2472 }
 0x3d8   : > { %v2475_v15 = vpop.permute.xlu1 %2474  ;;  %3182 = vst.msk [vmem:[%s4419_s12 + $0x360] sm:$0xff] %vm682_vm1, %v2473_v22 }
 0x3d9   : > { %3183 = vst.msk [vmem:[%s4419_s12 + $0x368] sm:$0xff] %vm682_vm1, %v2475_v15 }
 0x3db   : > { %v2477_v28 = vpop.permute.xlu0 %2476 }
 0x3dc   : > { %v2479_v23 = vpop.permute.xlu1 %2478  ;;  %3184 = vst.msk [vmem:[%s4419_s12 + $0x370] sm:$0xff] %vm682_vm1, %v2477_v28 }
 0x3dd   : > { %3185 = vst.msk [vmem:[%s4419_s12 + $0x378] sm:$0xff] %vm682_vm1, %v2479_v23 }
 0x3df   : > { %v2514_v36 = vpop.permute.xlu0 %2513 }
 0x3e0   : > { %v2516_v29 = vpop.permute.xlu1 %2515  ;;  %3186 = vst.msk [vmem:[%s4419_s12 + $0x380] sm:$0xff] %vm682_vm1, %v2514_v36 }
 0x3e1   : > { %3187 = vst.msk [vmem:[%s4419_s12 + $0x388] sm:$0xff] %vm682_vm1, %v2516_v29 }
 0x3e3   : > { %v2518_v46 = vpop.permute.xlu0 %2517 }
 0x3e4   : > { %v2520_v39 = vpop.permute.xlu1 %2519  ;;  %3188 = vst.msk [vmem:[%s4419_s12 + $0x390] sm:$0xff] %vm682_vm1, %v2518_v46 }
 0x3e5   : > { %3189 = vst.msk [vmem:[%s4419_s12 + $0x398] sm:$0xff] %vm682_vm1, %v2520_v39 }
 0x3e7   : > { %v2522_v56 = vpop.permute.xlu0 %2521 }
 0x3e8   : > { %v2524_v49 = vpop.permute.xlu1 %2523  ;;  %3190 = vst.msk [vmem:[%s4419_s12 + $0x3a0] sm:$0xff] %vm682_vm1, %v2522_v56 }
 0x3e9   : > { %3191 = vst.msk [vmem:[%s4419_s12 + $0x3a8] sm:$0xff] %vm682_vm1, %v2524_v49 }
 0x3eb   : > { %v2526_v60 = vpop.permute.xlu0 %2525 }
 0x3ec   : > { %v2528_v59 = vpop.permute.xlu1 %2527  ;;  %3192 = vst.msk [vmem:[%s4419_s12 + $0x3b0] sm:$0xff] %vm682_vm1, %v2526_v60 }
 0x3ed   : > { %3193 = vst.msk [vmem:[%s4419_s12 + $0x3b8] sm:$0xff] %vm682_vm1, %v2528_v59 }
 0x3ef   : > { %v2530_v8 = vpop.permute.xlu0 %2529 }
 0x3f0   : > { %v2532_v63 = vpop.permute.xlu1 %2531  ;;  %3194 = vst.msk [vmem:[%s4419_s12 + $0x3c0] sm:$0xff] %vm682_vm1, %v2530_v8 }
 0x3f1   : > { %3195 = vst.msk [vmem:[%s4419_s12 + $0x3c8] sm:$0xff] %vm682_vm1, %v2532_v63 }
 0x3f3   : > { %v2534_v11 = vpop.permute.xlu0 %2533 }
 0x3f4   : > { %v2536_v4 = vpop.permute.xlu1 %2535  ;;  %3196 = vst.msk [vmem:[%s4419_s12 + $0x3d0] sm:$0xff] %vm682_vm1, %v2534_v11 }
 0x3f5   : > { %3197 = vst.msk [vmem:[%s4419_s12 + $0x3d8] sm:$0xff] %vm682_vm1, %v2536_v4 }
 0x3f7   : > { %v2538_v7 = vpop.permute.xlu0 %2537 }
 0x3f8   : > { %v2540_v6 = vpop.permute.xlu1 %2539  ;;  %3198 = vst.msk [vmem:[%s4419_s12 + $0x3e0] sm:$0xff] %vm682_vm1, %v2538_v7 }
 0x3f9   : > { %3199 = vst.msk [vmem:[%s4419_s12 + $0x3e8] sm:$0xff] %vm682_vm1, %v2540_v6 }
 0x3fb   : > { %v2542_v9 = vpop.permute.xlu0 %2541 }
 0x3fc   : > { %v2544_v62 = vpop.permute.xlu1 %2543  ;;  %3200 = vst.msk [vmem:[%s4419_s12 + $0x3f0] sm:$0xff] %vm682_vm1, %v2542_v9 }
 0x3fd   : > { %3201 = vst.msk [vmem:[%s4419_s12 + $0x3f8] sm:$0xff] %vm682_vm1, %v2544_v62 }
 0x3fe PF: > { %s19_s29 = sadd.s32 1, %s3511_s29   ;;  %s5339_s27 = smov %s3507_s28 }
 0x3ff   : > { %p16_p5 = scmp.ge.s32.totalorder %s19_s29, 4   ;;  %s5340_s28 = smov %s5342_s30 }
 0x401   :  { %18 = sbr.rel (!%p16_p5) target bundleno = 2 (0x2), region = 125 }

</bundles_post_ra>
